<compile_context>
chip_gen: v5e
topology: v5e:2x2
jax: 0.10.0
libtpu: 0.0.40
codegen_flags: <defaults>
</compile_context>

<pallas_src>
import jax
import jax.numpy as jnp
from jax import lax
from jax.experimental import pallas as pl
from jax.experimental.pallas import tpu as pltpu

_EPS = 1e-5


# ---------------------------------------------------------------------------
# Generation-aware VMEM budget (v5e/v6e: 128 MiB, v7x: 64 MiB per TensorCore).
# ---------------------------------------------------------------------------
def _vmem_limit_bytes():
    try:
        cap = int(pltpu.get_tpu_info().vmem_capacity_bytes)
    except Exception:  # query unavailable: assume v7x's 64 MiB (safe everywhere)
        cap = 64 * 1024 * 1024
    return max(32 * 1024 * 1024, min(int(cap * 0.6), 100 * 1024 * 1024))


# ---------------------------------------------------------------------------
# 1) Standalone nor_mean_std kernel: per-(N, C) normalization over H*W.
#    Layout: (N*C, H*W) rows -> sublane-dense blocks, lane reduction per row.
# ---------------------------------------------------------------------------
def _nor_mean_std_kernel(x_ref, o_ref):
    x = x_ref[...]                                  # (TR, HW)
    n = x.shape[-1]
    xf = x.astype(jnp.float32)

    # Fused single pass: sum(x), sum(x*x) accumulated in f32.
    s1 = jnp.sum(xf, axis=-1, keepdims=True)
    s2 = jnp.sum(xf * xf, axis=-1, keepdims=True)
    mean = s1 * jnp.float32(1.0 / n)
    # Unbiased (n-1) variance to match torch.var()'s default in calc_mean_std.
    var = jnp.maximum((s2 - s1 * mean) * jnp.float32(1.0 / max(n - 1, 1)), 0.0)
    inv = lax.rsqrt(var + _EPS)

    if x.dtype == jnp.float32:
        o_ref[...] = ((xf - mean) * inv).astype(o_ref.dtype)
    else:
        # bf16 inputs: keep the elementwise pass in the input dtype
        # (bf16 VALU on v6e/v7x); only the reductions used f32.
        o_ref[...] = ((x - mean.astype(x.dtype)) * inv.astype(x.dtype)).astype(o_ref.dtype)


def nor_mean_std_pallas(x):
    """nor_mean_std(x): per-(N, C) mean/std normalization over spatial dims."""
    b, c = x.shape[0], x.shape[1]
    hw = 1
    for d in x.shape[2:]:
        hw *= d
    r = b * c
    x2d = x.reshape(r, hw)

    vmem_limit = _vmem_limit_bytes()
    # Per-resident-buffer budget: 2 double-buffered input tiles + 2 output
    # tiles + the in-kernel f32 working copy  ->  vmem_limit / 5.
    per_buf_budget = vmem_limit // 5
    bytes_per_row = max(hw * 4, 1)                  # f32 working copy dominates
    tr = max(1, per_buf_budget // bytes_per_row)
    tr = min(tr, r)
    # v7x has 2 TensorCores: make sure the (parallel) row grid has >= 2 steps.
    if r >= 16 and pl.cdiv(r, tr) < 2:
        tr = pl.cdiv(r, 2)
    if tr >= 8:
        tr = (tr // 8) * 8                          # sublane-aligned row tiles
    else:
        # Fewer than 8 rows fit the budget, or r < 8: one full-extent block.
        # TODO(synk): HW-tiled two-pass fallback for rows so large that even an
        # 8-row block overflows VMEM (>~1 MiB of f32 per channel row).
        tr = r

    grid = (pl.cdiv(r, tr),)
    itemsize = jnp.dtype(x.dtype).itemsize
    cost = pl.CostEstimate(
        flops=int(5 * r * hw),
        transcendentals=int(r),
        bytes_accessed=int(2 * r * hw * itemsize),
    )

    out2d = pl.pallas_call(
        _nor_mean_std_kernel,
        out_shape=jax.ShapeDtypeStruct((r, hw), x.dtype),
        grid=grid,
        in_specs=[pl.BlockSpec((tr, hw), lambda i: (i, 0))],
        out_specs=pl.BlockSpec((tr, hw), lambda i: (i, 0)),
        compiler_params=pltpu.CompilerParams(
            dimension_semantics=("parallel",),
            vmem_limit_bytes=vmem_limit,
        ),
        cost_estimate=cost,
    )(x2d)
    return out2d.reshape(x.shape)


# ---------------------------------------------------------------------------
# 2) Fused utm.forward (init=False, noise=None): per-batch kernel, norm fused
#    as prologue into the 1x1-conv / cov / bmm / uncompress consumers.
# ---------------------------------------------------------------------------
def _utm_fused_kernel(c_ref, s_ref, w1_ref, b1_ref, w2_ref, b2_ref,
                      wu_ref, bu_ref, o_ref):
    x = c_ref[0].astype(jnp.float32)                # (C, HW) content
    y = s_ref[0].astype(jnp.float32)                # (C, HW) style
    hw = x.shape[-1]
    inv_hw = jnp.float32(1.0 / hw)

    # nor_mean_std(content): per-channel over spatial, unbiased variance.
    c_mean = jnp.sum(x, axis=-1, keepdims=True) * inv_hw
    xc = x - c_mean
    c_var = jnp.sum(xc * xc, axis=-1, keepdims=True) * jnp.float32(1.0 / max(hw - 1, 1))
    x_nor = xc * lax.rsqrt(c_var + _EPS)

    # nor_mean(style): subtract per-channel mean, keep the mean (smean).
    s_mean = jnp.sum(y, axis=-1, keepdims=True) * inv_hw
    y_nor = y - s_mean

    w1 = w1_ref[...]; b1 = b1_ref[...]              # (128, 256), (128, 1)
    w2 = w2_ref[...]; b2 = b2_ref[...]              # (32, 128),  (32, 1)

    def net(z):  # 1x1 conv -> ReLU -> 1x1 conv == channel matmuls on the MXU
        a = jnp.dot(w1, z, preferred_element_type=jnp.float32) + b1
        a = jnp.maximum(a, 0.0)
        return jnp.dot(w2, a, preferred_element_type=jnp.float32) + b2

    cF = net(x_nor)                                 # (32, HW)
    sF = net(y_nor)                                 # (32, HW)

    # calc_cov(sF): contract over HW (no materialized transpose) -> (32, 32).
    s_cov = lax.dot_general(sF, sF, (((1,), (1,)), ((), ())),
                            preferred_element_type=jnp.float32) * inv_hw

    # s_cov += softmax(s_cov, dim=-1) * c1 ** (-0.5)
    m = jnp.max(s_cov, axis=-1, keepdims=True)
    e = jnp.exp(s_cov - m)
    sm = e / jnp.sum(e, axis=-1, keepdims=True)
    s_cov = s_cov + sm * jnp.float32(s_cov.shape[-1] ** -0.5)

    # bmm(s_cov, cF) then uncompress (1x1 conv) and residual adds.
    gF = jnp.dot(s_cov, cF, preferred_element_type=jnp.float32)          # (32, HW)
    gF = jnp.dot(wu_ref[...], gF, preferred_element_type=jnp.float32) + bu_ref[...]  # (C, HW)

    o_ref[0] = (gF + s_mean + x).astype(o_ref.dtype)


def utm_forward_pallas(content, style, params):
    """Fused utm.forward(content, style, noise=None, init=False)."""
    w1, b1, w2, b2, wu, bu = params
    b, c, h, w = content.shape
    hw = h * w
    c1, c_in = w1.shape
    c2 = w2.shape[0]
    c_out = wu.shape[0]
    assert c_in == c and c_out == c

    x3 = content.reshape(b, c, hw)
    y3 = style.reshape(b, c, hw)
    b1c = b1.reshape(c1, 1)
    b2c = b2.reshape(c2, 1)
    buc = bu.reshape(c_out, 1)

    vmem_limit = _vmem_limit_bytes()
    mac = b * hw * (2 * (c1 * c + c2 * c1) + 2 * c2 * c2 + c_out * c2)
    weight_elems = w1.size + w2.size + wu.size + b1.size + b2.size + bu.size
    cost = pl.CostEstimate(
        flops=int(2 * mac + 10 * b * c * hw),
        transcendentals=int(b * (c2 * c2 + c)),
        bytes_accessed=int((3 * b * c * hw + weight_elems) * 4),
    )

    out3 = pl.pallas_call(
        _utm_fused_kernel,
        out_shape=jax.ShapeDtypeStruct((b, c, hw), content.dtype),
        grid=(b,),
        in_specs=[
            pl.BlockSpec((1, c, hw), lambda i: (i, 0, 0)),
            pl.BlockSpec((1, c, hw), lambda i: (i, 0, 0)),
            pl.BlockSpec((c1, c), lambda i: (0, 0)),
            pl.BlockSpec((c1, 1), lambda i: (0, 0)),
            pl.BlockSpec((c2, c1), lambda i: (0, 0)),
            pl.BlockSpec((c2, 1), lambda i: (0, 0)),
            pl.BlockSpec((c_out, c2), lambda i: (0, 0)),
            pl.BlockSpec((c_out, 1), lambda i: (0, 0)),
        ],
        out_specs=pl.BlockSpec((1, c, hw), lambda i: (i, 0, 0)),
        compiler_params=pltpu.CompilerParams(
            dimension_semantics=("parallel",),
            vmem_limit_bytes=vmem_limit,
        ),
        cost_estimate=cost,
    )(x3, y3, w1, b1c, w2, b2c, wu, buc)
    return out3.reshape(b, c, h, w)


# ---------------------------------------------------------------------------
# Pure-JAX references.
# ---------------------------------------------------------------------------
def _calc_mean_std_ref(feat4d, eps=_EPS):
    b, c = feat4d.shape[:2]
    f = feat4d.reshape(b, c, -1)
    mean = jnp.mean(f, axis=-1, keepdims=True)
    var = jnp.var(f, axis=-1, ddof=1, keepdims=True)
    return mean, jnp.sqrt(var + eps)


def _nor_mean_std_ref(feat4d):
    b, c = feat4d.shape[:2]
    mean, std = _calc_mean_std_ref(feat4d)
    f = feat4d.reshape(b, c, -1)
    return ((f - mean) / std).reshape(feat4d.shape)


def _utm_forward_ref(content, style, params):
    w1, b1, w2, b2, wu, bu = params
    b, c, h, w = content.shape
    hw = h * w
    hi = jax.lax.Precision.HIGHEST

    def net(z3):
        a = jnp.einsum("oc,bch->boh", w1, z3, precision=hi) + b1[None, :, None]
        a = jnp.maximum(a, 0.0)
        return jnp.einsum("oc,bch->boh", w2, a, precision=hi) + b2[None, :, None]

    cF_nor = _nor_mean_std_ref(content).reshape(b, c, hw)
    s3 = style.reshape(b, c, hw)
    smean = jnp.mean(s3, axis=-1, keepdims=True)
    sF_nor = s3 - smean

    cF = net(cF_nor)
    sF = net(sF_nor)
    s_cov = jnp.einsum("bch,bdh->bcd", sF, sF, precision=hi) / hw
    s_cov = s_cov + jax.nn.softmax(s_cov, axis=-1) * (s_cov.shape[-1] ** -0.5)
    gF = jnp.einsum("bcd,bdh->bch", s_cov, cF, precision=hi)
    gF = jnp.einsum("oc,bch->boh", wu, gF, precision=hi) + bu[None, :, None]
    out = gF + smean + content.reshape(b, c, hw)
    return out.reshape(b, c, h, w)


if __name__ == "__main__":
    key = jax.random.PRNGKey(0)
    kc, ks, k1, k2, k3, k4, k5, k6 = jax.random.split(key, 8)

    # Small shapes consistent with utm: channels must be 256 for self.net.
    B, C, H, W = 2, 256, 16, 16
    content = jax.random.normal(kc, (B, C, H, W), dtype=jnp.float32)
    style = jax.random.normal(ks, (B, C, H, W), dtype=jnp.float32)

    w1 = 0.05 * jax.random.normal(k1, (128, 256), dtype=jnp.float32)
    b1 = 0.05 * jax.random.normal(k2, (128,), dtype=jnp.float32)
    w2 = 0.05 * jax.random.normal(k3, (32, 128), dtype=jnp.float32)
    b2 = 0.05 * jax.random.normal(k4, (32,), dtype=jnp.float32)
    wu = 0.05 * jax.random.normal(k5, (256, 32), dtype=jnp.float32)
    bu = 0.05 * jax.random.normal(k6, (256,), dtype=jnp.float32)
    params = (w1, b1, w2, b2, wu, bu)

    # 1) Standalone nor_mean_std hot-path kernel.
    out_nor = nor_mean_std_pallas(content)
    jax.block_until_ready(out_nor)
    ref_nor = _nor_mean_std_ref(content)
    assert jnp.allclose(out_nor, ref_nor, atol=1e-4, rtol=1e-4), "nor_mean_std mismatch"

    # 2) Fused utm.forward (init=False, noise=None).
    out = utm_forward_pallas(content, style, params)
    jax.block_until_ready(out)
    ref = _utm_forward_ref(content, style, params)
    assert jnp.allclose(out, ref, atol=2e-2, rtol=2e-2), "utm forward mismatch"

    print("KERNEL_OK")
</pallas_src>

<mosaic_0001>
module attributes {stable_mosaic.version = 11 : i64} {
  func.func @_nor_mean_std_kernel(%arg0: i32, %arg1: memref<256x256xf32, #tpu.memory_space<vmem>>, %arg2: memref<256x256xf32, #tpu.memory_space<vmem>>) attributes {dimension_semantics = [#tpu.dimension_semantics<parallel>], iteration_bounds = array<i64: 2>, scalar_prefetch = 0 : i64, scratch_operands = 0 : i64, tpu.core_type = #tpu.core_type<tc>, window_params = [{transform_indices = @transform_0, window_bounds = array<i64: 256, 256>}, {transform_indices = @transform_1, window_bounds = array<i64: 256, 256>}]} {
    %c0 = arith.constant 0 : index
    %c0_0 = arith.constant 0 : index
    %0 = vector.load %arg1[%c0, %c0_0] : memref<256x256xf32, #tpu.memory_space<vmem>>, vector<256x256xf32>
    %cst = arith.constant dense<0.000000e+00> : vector<256xf32>
    %1 = vector.multi_reduction <add>, %0, %cst [1] : vector<256x256xf32> to vector<256xf32>
    %2 = vector.shape_cast %1 : vector<256xf32> to vector<256x1xf32>
    %3 = arith.mulf %0, %0 : vector<256x256xf32>
    %cst_1 = arith.constant dense<0.000000e+00> : vector<256xf32>
    %4 = vector.multi_reduction <add>, %3, %cst_1 [1] : vector<256x256xf32> to vector<256xf32>
    %5 = vector.shape_cast %4 : vector<256xf32> to vector<256x1xf32>
    %cst_2 = arith.constant 3.906250e-03 : f32
    %6 = vector.broadcast %cst_2 : f32 to vector<256x1xf32>
    %7 = arith.mulf %2, %6 : vector<256x1xf32>
    %8 = arith.mulf %2, %7 : vector<256x1xf32>
    %9 = arith.subf %5, %8 : vector<256x1xf32>
    %cst_3 = arith.constant 0.00392156886 : f32
    %10 = vector.broadcast %cst_3 : f32 to vector<256x1xf32>
    %11 = arith.mulf %9, %10 : vector<256x1xf32>
    %cst_4 = arith.constant 0.000000e+00 : f32
    %12 = vector.broadcast %cst_4 : f32 to vector<256x1xf32>
    %13 = arith.maximumf %11, %12 : vector<256x1xf32>
    %cst_5 = arith.constant 9.99999974E-6 : f32
    %14 = vector.broadcast %cst_5 : f32 to vector<256x1xf32>
    %15 = arith.addf %13, %14 : vector<256x1xf32>
    %16 = math.rsqrt %15 : vector<256x1xf32>
    %17 = vector.broadcast %7 : vector<256x1xf32> to vector<256x256xf32>
    %18 = arith.subf %0, %17 : vector<256x256xf32>
    %19 = vector.broadcast %16 : vector<256x1xf32> to vector<256x256xf32>
    %20 = arith.mulf %18, %19 : vector<256x256xf32>
    %c0_6 = arith.constant 0 : index
    %c0_7 = arith.constant 0 : index
    %21 = vector.load %arg2[%c0_6, %c0_7] : memref<256x256xf32, #tpu.memory_space<vmem>>, vector<256x256xf32>
    tpu.vector_store %arg2[%c0_6, %c0_7], %20 {strides = array<i32>} : memref<256x256xf32, #tpu.memory_space<vmem>>, vector<256x256xf32>,
    return
  }
  func.func @transform_0(%arg0: i32) -> (i32, i32) {
    %c0_i32 = arith.constant 0 : i32
    %c0_i32_0 = arith.constant 0 : i32
    return %arg0, %c0_i32 : i32, i32
  }
  func.func @transform_1(%arg0: i32) -> (i32, i32) {
    %c0_i32 = arith.constant 0 : i32
    %c0_i32_0 = arith.constant 0 : i32
    return %arg0, %c0_i32 : i32, i32
  }
}

</mosaic_0001>

<bundles_post_ra>
// kernel: tpu_custom_call.1
= control target key start
LH: loop header
LB: loop body
LE: loop exit
PB: predicated region body
PF: predicated region fallthrough
CT: control target
= control target key end

     0   :  { %6 = vsyncpa [#allocation3], 0  ;;  %s3030_s0 = inlined_call_operand.hbm [shape: f32[512,256], index: 0, kind: input, shape index: {}]   ;;  %s3031_s1 = inlined_call_operand.hbm [shape: f32[512,256], index: 1, kind: output, shape index: {}]  }
   0x1   :  { %8 = vsyncpa [#allocation3 + $0x1], 0 }
   0x2   :  { %9 = vsyncpa [#allocation4], 0 }
   0x3   :  { %11 = vsyncpa [#allocation4 + $0x1], 0  ;;  %s1514_s6 = smov 0   ;;  %s1516_s7 = smov 0  }
   0x4   :  { %s1518_s8 = smov 0   ;;  %s1520_s9 = smov 0  }
   0x5 LB: > { %s1535_s10 = sadd.s32 4294967295, %s1498_s9   ;;  %s1254_s11 = sadd.s32 4294967294, %s1498_s9   ;;  %s1498_s9 = sphi %s1520_s9, %s3396_s9   ;;  %s1494_s8 = sphi %s1518_s8, %s3395_s8   ;;  %s1490_s7 = sphi %s1516_s7, %s3394_s7   ;;  %s1486_s6 = sphi %s1514_s6, %s3393_s6  }
   0x6   : > { %s1539_s12 = sadd.s32 1, %s1498_s9   ;;  %s24_s13 = sadd.s32 1, %s1494_s8 }
   0x7   : > { %s21_s14 = ssub.s32 %s1498_s9, %s1539_s12  ;;  %p31_p0 = scmp.ne.s32.totalorder %s1494_s8, %s1490_s7 }
   0x8   : > { %p22_p1 = scmp.eq.s32.totalorder %s21_s14, 0  ;;  %p32_p2 = scmp.eq.s32.totalorder %s1498_s9, 0 }
   0x9   : > { %p37_p3 = scmp.ne.s32.totalorder %s1490_s7, %s1486_s6  ;;  %p38_p4 = scmp.eq.s32.totalorder %s1535_s10, 0 }
   0xa   : > { %s1551_s15 = scalar_select %p22_p1, %s1494_s8, %s24_s13  }
   0xb   : > { %p1553_p5 = por %p32_p2, %p31_p0  ;;  %p1557_p6 = por %p38_p4, %p37_p3 }
   0xc   : > { %p61_p7 = scmp.eq.s32.totalorder %s1535_s10, 1  ;;  %p67_p8 = scmp.eq.s32.totalorder %s1254_s11, 1 }
   0xd   : > { %p1286_p10 = scmp.lt.s32.totalorder %s1498_s9, 2  ;;  %s87_s20 = sand.u32 1, %s1494_s8  }
   0xe   : > { %p1564_p11 = por %p61_p7, %p31_p0  ;;  %p1568_p12 = por %p67_p8, %p37_p3 }
   0xf   : > { %s1271_s21 = sshll.u32 %s1498_s9, 9  ;;  %s1257_s22 = sshll.u32 %s87_s20, 9 }
  0x10   : > { %s97_s25 = scalar_lea.hbm %s3030_s0, %s1271_s21  ;;  %s91_s27 = scalar_lea.vmem [#allocation2], %s1257_s22 }
  0x11   : > { %s98_s26 = sshll.u32 %s97_s25, 4  ;;  %s100_s28 = sshll.u32 %s91_s27, 4  ;;  %s99_s26 = int_to_ptr.hbm [resolvable:$true] %s98_s26  ;;  %s101_s28 = int_to_ptr.vmem [resolvable:$true] %s100_s28 }
  0x12   : > { %p1579_p13 = pnand %p1286_p10, %p1553_p5  ;;  %p1261_p0 = scmp.ge.s32.totalorder %s1498_s9, 1 }
  0x13   : > { %p108_p1 = scmp.lt.s32.totalorder %s1498_s9, 3  ;;  %s88_s30 = scalar_lea.sflag [#allocation3], %s87_s20 }
  0x14   : > { %s1402_s2 = sshra.s32 %s99_s26, 4  ;;  %p1406_p3 = pneg %p1579_p13  ;;  %s1403_s2 = int_to_ptr.hbm [resolvable:$true] %s1402_s2 }
  0x15   : > { %s1404_s3 = scalar_lea.hbm %s1403_s2, 512  ;;  %s1409_s11 = scalar_lea.hbm %s3030_s0, 1024 }
  0x16   : > { %p1405_p2 = scmp.ne.s32.totalorder %s1403_s2, %s1404_s3  ;;  %p1410_p5 = scmp.lt.s32.totalorder %s1403_s2, %s3030_s0 }
  0x17   : > { %p1411_p8 = scmp.lt.s32.totalorder %s1409_s11, %s1404_s3 }
  0x18   : > { %p1407_p4 = pnand %p1406_p3, %p1405_p2 }
  0x19   : > { %p1412_p10 = por %p1411_p8, %p1410_p5 }
  0x1a   : > { %p1408_p7 = pneg %p1407_p4 }
  0x1c   : > { %p1413_p9 = pnand %p1412_p10, %p1408_p7 }
  0x1e   : > { %1416 = shalt.err (!%p1413_p9)
}
  0x1f   : > { %s1500_s16 = smov 256   ;;  %s1501_s20 = smov 16  }
  0x20   : > { %1281 = dma.hbm_to_vmem [thread:$0]  (!%p1579_p13), %s99_s26, 8192, %s101_s28, %s88_s30, %s1500_s16, %s1500_s16, %s1501_s20  }
  0x21   : > { %p109_p2 = pnand %p1261_p0, %p108_p1 }
  0x23   : > { %112 = sbr.rel (%p109_p2) target bundleno = 407 (0x197), region = 24 }
  0x28   : > { %s1600_s21 = sand.u32 1, %s1490_s7  }
  0x29   : > { %s1262_s22 = sshll.u32 %s1600_s21, 9  ;;  %s115_s23 = scalar_lea.sflag [#allocation3], %s1600_s21 }
  0x2a   : > { %s1606_s24 = scalar_lea.vmem [#allocation2], %s1262_s22 }
  0x2b   : > { %1477 = dma.done.wait (%p1557_p6), %s115_s23, 8192  }
  0x2c   : > { %1479 = vsyncadd (%p1557_p6), %s115_s23, 4294959104  ;;  %v1613_v0 = vld [vmem:[%s1606_s24 + $0x40] sm:$0xff]  ;;  %v1616_v1 = vld [vmem:[%s1606_s24 + $0x48] sm:$0xff]  ;;  %s2411_s17 = scalar_lea.vmem [#allocation5], %s1262_s22  ;;  %s1273_s25 = sshll.u32 %s1535_s10, 9 }
  0x2d   : > { %3155 = vst [vmem:[#allocation8_spill] sm:$0xff] %v1613_v0  ;;  %v1619_v2 = vld [vmem:[%s1606_s24 + $0x20] sm:$0xff]  ;;  %v216_v3 = vadd.f32 %v1616_v1, %v1613_v0  ;;  %v1624_v4 = vld [vmem:[%s1606_s24 + $0x28] sm:$0xff]  ;;  %v1637_v9 = vld [vmem:[%s1606_s24 + $0x50] sm:$0xff]  ;;  %s1177_s27 = scalar_lea.hbm %s3031_s1, %s1273_s25  ;;  %s1178_s28 = sshll.u32 %s2411_s17, 4  ;;  %s1179_s28 = int_to_ptr.vmem [resolvable:$true] %s1178_s28 }
  0x2e   : > { %3156 = vst [vmem:[#allocation9_spill] sm:$0xff] %v1616_v1  ;;  %v1627_v5 = vld [vmem:[%s1606_s24] sm:$0xff]  ;;  %v1630_v6 = vld [vmem:[%s1606_s24 + $0x8] sm:$0xff]  ;;  %v210_v7 = vadd.f32 %v1624_v4, %v1619_v2  ;;  %v1640_v10 = vld [vmem:[%s1606_s24 + $0x58] sm:$0xff]  ;;  %s1180_s29 = sshll.u32 %s1177_s27, 4  ;;  %s1165_s30 = scalar_lea.sflag [#allocation4], %s1600_s21  ;;  %s1181_s29 = int_to_ptr.hbm [resolvable:$true] %s1180_s29 }
  0x2f   : > { %3157 = vst [vmem:[#allocation10_spill] sm:$0xff] %v1619_v2  ;;  %v204_v8 = vadd.f32 %v1630_v6, %v1627_v5  ;;  %217 = vadd.xlane.f32.xlu2 %v216_v3  ;;  %v1643_v11 = vld [vmem:[%s1606_s24 + $0x30] sm:$0xff]  ;;  %v1646_v12 = vld [vmem:[%s1606_s24 + $0x38] sm:$0xff]  ;;  %v219_v15 = vadd.f32 %v1640_v10, %v1637_v9  ;;  %v1661_v18 = vld [vmem:[%s1606_s24 + $0x80] sm:$0xff]  ;;  %s1446_s2 = sshra.s32 %s1181_s29, 4  ;;  %s1452_s11 = scalar_lea.hbm %s3031_s1, 1024  ;;  %s1447_s2 = int_to_ptr.hbm [resolvable:$true] %s1446_s2 }
  0x30   : > { %3158 = vst [vmem:[#allocation11_spill] sm:$0xff] %v1624_v4  ;;  %211 = vadd.xlane.f32.xlu1 %v210_v7  ;;  %v1649_v13 = vld [vmem:[%s1606_s24 + $0x10] sm:$0xff]  ;;  %v1652_v14 = vld [vmem:[%s1606_s24 + $0x18] sm:$0xff]  ;;  %v213_v16 = vadd.f32 %v1646_v12, %v1643_v11  ;;  %v1664_v19 = vld [vmem:[%s1606_s24 + $0x88] sm:$0xff]  ;;  %s1448_s3 = scalar_lea.hbm %s1447_s2, 512  ;;  %p1453_p0 = scmp.lt.s32.totalorder %s1447_s2, %s3031_s1 }
  0x31   : > { %3159 = vst [vmem:[#allocation12_spill] sm:$0xff] %v1627_v5  ;;  %205 = vadd.xlane.f32.xlu0 %v204_v8  ;;  %v207_v17 = vadd.f32 %v1652_v14, %v1649_v13  ;;  %v1667_v20 = vld [vmem:[%s1606_s24 + $0x70] sm:$0xff]  ;;  %v1670_v21 = vld [vmem:[%s1606_s24 + $0x78] sm:$0xff]  ;;  %v1673_v22 = vld [vmem:[%s1606_s24 + $0x60] sm:$0xff]  ;;  %v228_v24 = vadd.f32 %v1664_v19, %v1661_v18  ;;  %p1449_p6 = scmp.ne.s32.totalorder %s1447_s2, %s1448_s3  ;;  %p1454_p1 = scmp.lt.s32.totalorder %s1452_s11, %s1448_s3 }
  0x32   : > { %3160 = vst [vmem:[#allocation13_spill] sm:$0xff] %v1630_v6  ;;  %v1676_v23 = vld [vmem:[%s1606_s24 + $0x68] sm:$0xff]  ;;  %v225_v25 = vadd.f32 %v1670_v21, %v1667_v20  ;;  %v1685_v27 = vld [vmem:[%s1606_s24 + $0xb0] sm:$0xff]  ;;  %v1688_v28 = vld [vmem:[%s1606_s24 + $0xb8] sm:$0xff] }
  0x33   : > { %3161 = vst [vmem:[#allocation14_spill] sm:$0xff] %v1637_v9  ;;  %v222_v26 = vadd.f32 %v1676_v23, %v1673_v22  ;;  %v1691_v29 = vld [vmem:[%s1606_s24 + $0xa0] sm:$0xff]  ;;  %v1694_v30 = vld [vmem:[%s1606_s24 + $0xa8] sm:$0xff]  ;;  %v1697_v31 = vld [vmem:[%s1606_s24 + $0x90] sm:$0xff]  ;;  %v237_v33 = vadd.f32 %v1688_v28, %v1685_v27  ;;  %p1450_p9 = pnand %p1449_p6, %p1564_p11  ;;  %p1455_p3 = por %p1454_p1, %p1453_p0 }
  0x34   : > { %3162 = vst [vmem:[#allocation15_spill] sm:$0xff] %v1640_v10  ;;  %v1700_v32 = vld [vmem:[%s1606_s24 + $0x98] sm:$0xff]  ;;  %v234_v34 = vadd.f32 %v1694_v30, %v1691_v29  ;;  %v1709_v36 = vld [vmem:[%s1606_s24 + $0xe0] sm:$0xff]  ;;  %v1712_v37 = vld [vmem:[%s1606_s24 + $0xe8] sm:$0xff] }
  0x35   : > { %3163 = vst [vmem:[#allocation16_spill] sm:$0xff] %v1643_v11  ;;  %v231_v35 = vadd.f32 %v1700_v32, %v1697_v31  ;;  %v1715_v38 = vld [vmem:[%s1606_s24 + $0xd0] sm:$0xff]  ;;  %v1718_v39 = vld [vmem:[%s1606_s24 + $0xd8] sm:$0xff]  ;;  %v1721_v40 = vld [vmem:[%s1606_s24 + $0xc0] sm:$0xff]  ;;  %v246_v42 = vadd.f32 %v1712_v37, %v1709_v36  ;;  %p1451_p13 = pneg %p1450_p9 }
  0x36   : > { %3164 = vst [vmem:[#allocation17_spill] sm:$0xff] %v1646_v12  ;;  %v1724_v41 = vld [vmem:[%s1606_s24 + $0xc8] sm:$0xff]  ;;  %v243_v43 = vadd.f32 %v1718_v39, %v1715_v38  ;;  %v1733_v45 = vld [vmem:[%s1606_s24 + $0x110] sm:$0xff]  ;;  %v1736_v46 = vld [vmem:[%s1606_s24 + $0x118] sm:$0xff] }
  0x37   : > { %3165 = vst [vmem:[#allocation18_spill] sm:$0xff] %v1649_v13  ;;  %220 = vadd.xlane.f32.xlu2 %v219_v15  ;;  %v240_v44 = vadd.f32 %v1724_v41, %v1721_v40  ;;  %v1739_v47 = vld [vmem:[%s1606_s24 + $0x100] sm:$0xff]  ;;  %v1742_v48 = vld [vmem:[%s1606_s24 + $0x108] sm:$0xff]  ;;  %v1745_v49 = vld [vmem:[%s1606_s24 + $0xf0] sm:$0xff]  ;;  %v255_v51 = vadd.f32 %v1736_v46, %v1733_v45  ;;  %p1456_p4 = pnand %p1455_p3, %p1451_p13 }
  0x38   : > { %3166 = vst [vmem:[#allocation19_spill] sm:$0xff] %v1652_v14  ;;  %214 = vadd.xlane.f32.xlu1 %v213_v16  ;;  %v1748_v50 = vld [vmem:[%s1606_s24 + $0xf8] sm:$0xff]  ;;  %v252_v52 = vadd.f32 %v1742_v48, %v1739_v47  ;;  %v1757_v54 = vld [vmem:[%s1606_s24 + $0x140] sm:$0xff]  ;;  %v1760_v55 = vld [vmem:[%s1606_s24 + $0x148] sm:$0xff] }
  0x39   : > { %208 = vadd.xlane.f32.xlu0 %v207_v17  ;;  %3167 = vst [vmem:[#allocation20_spill] sm:$0xff] %v1664_v19  ;;  %v249_v53 = vadd.f32 %v1748_v50, %v1745_v49  ;;  %v1763_v56 = vld [vmem:[%s1606_s24 + $0x130] sm:$0xff]  ;;  %v1766_v57 = vld [vmem:[%s1606_s24 + $0x138] sm:$0xff]  ;;  %v1769_v58 = vld [vmem:[%s1606_s24 + $0x120] sm:$0xff]  ;;  %v264_v60 = vadd.f32 %v1760_v55, %v1757_v54 }
  0x3a   : > { %3168 = vst [vmem:[#allocation21_spill] sm:$0xff] %v1670_v21  ;;  %v1772_v59 = vld [vmem:[%s1606_s24 + $0x128] sm:$0xff]  ;;  %v261_v61 = vadd.f32 %v1766_v57, %v1763_v56  ;;  %v1781_v63 = vld [vmem:[%s1606_s24 + $0x170] sm:$0xff]  ;;  %v1784_v3 = vld [vmem:[%s1606_s24 + $0x178] sm:$0xff] }
  0x3b   : > { %3169 = vst [vmem:[#allocation22_spill] sm:$0xff] %v1685_v27  ;;  %v258_v62 = vadd.f32 %v1772_v59, %v1769_v58  ;;  %v1787_v7 = vld [vmem:[%s1606_s24 + $0x160] sm:$0xff]  ;;  %v1790_v8 = vld [vmem:[%s1606_s24 + $0x168] sm:$0xff]  ;;  %v1793_v15 = vld [vmem:[%s1606_s24 + $0x150] sm:$0xff]  ;;  %v273_v17 = vadd.f32 %v1784_v3, %v1781_v63 }
  0x3c   : > { %3170 = vst [vmem:[#allocation23_spill] sm:$0xff] %v1688_v28  ;;  %v1796_v16 = vld [vmem:[%s1606_s24 + $0x158] sm:$0xff] }
  0x3d   : > { %3171 = vst [vmem:[#allocation24_spill] sm:$0xff] %v1691_v29 }
  0x3e   : > { %3172 = vst [vmem:[#allocation25_spill] sm:$0xff] %v1694_v30 }
  0x3f   : > { %229 = vadd.xlane.f32.xlu2 %v228_v24  ;;  %3173 = vst [vmem:[#allocation26_spill] sm:$0xff] %v1712_v37  ;;  %v270_v24 = vadd.f32 %v1790_v8, %v1787_v7 }
  0x40   : > { %226 = vadd.xlane.f32.xlu1 %v225_v25  ;;  %3174 = vst [vmem:[#allocation27_spill] sm:$0xff] %v1715_v38  ;;  %v267_v25 = vadd.f32 %v1796_v16, %v1793_v15 }
  0x41   : > { %223 = vadd.xlane.f32.xlu0 %v222_v26  ;;  %3175 = vst [vmem:[#allocation28_spill] sm:$0xff] %v1718_v39  ;;  %v1805_v26 = vld [vmem:[%s1606_s24 + $0x1a0] sm:$0xff] }
  0x42   : > { %3176 = vst [vmem:[#allocation29_spill] sm:$0xff] %v1724_v41 }
  0x43   : > { %3177 = vst [vmem:[#allocation30_spill] sm:$0xff] %v1733_v45 }
  0x44   : > { %3178 = vst [vmem:[#allocation31_spill] sm:$0xff] %v1736_v46 }
  0x45   : > { %3179 = vst [vmem:[#allocation32_spill] sm:$0xff] %v1739_v47 }
  0x46   : > { %3180 = vst [vmem:[#allocation33_spill] sm:$0xff] %v1742_v48 }
  0x47   : > { %238 = vadd.xlane.f32.xlu2 %v237_v33  ;;  %3181 = vst [vmem:[#allocation34_spill] sm:$0xff] %v1745_v49  ;;  %v1808_v33 = vld [vmem:[%s1606_s24 + $0x1a8] sm:$0xff] }
  0x48   : > { %235 = vadd.xlane.f32.xlu1 %v234_v34  ;;  %3182 = vst [vmem:[#allocation35_spill] sm:$0xff] %v1748_v50  ;;  %v1811_v34 = vld [vmem:[%s1606_s24 + $0x190] sm:$0xff] }
  0x49   : > { %232 = vadd.xlane.f32.xlu0 %v231_v35  ;;  %3183 = vst [vmem:[#allocation36_spill] sm:$0xff] %v1757_v54  ;;  %v1814_v35 = vld [vmem:[%s1606_s24 + $0x198] sm:$0xff] }
  0x4a   : > { %3184 = vst [vmem:[#allocation37_spill] sm:$0xff] %v1760_v55 }
  0x4b   : > { %3185 = vst [vmem:[#allocation38_spill] sm:$0xff] %v1763_v56 }
  0x4c   : > { %3186 = vst [vmem:[#allocation39_spill] sm:$0xff] %v1766_v57 }
  0x4d   : > { %3187 = vst [vmem:[#allocation40_spill] sm:$0xff] %v1769_v58 }
  0x4e   : > { %3188 = vst [vmem:[#allocation41_spill] sm:$0xff] %v1772_v59 }
  0x4f   : > { %247 = vadd.xlane.f32.xlu2 %v246_v42  ;;  %3189 = vst [vmem:[#allocation42_spill] sm:$0xff] %v1781_v63  ;;  %v1817_v42 = vld [vmem:[%s1606_s24 + $0x180] sm:$0xff] }
  0x50   : > { %244 = vadd.xlane.f32.xlu1 %v243_v43  ;;  %3190 = vst [vmem:[#allocation43_spill] sm:$0xff] %v1784_v3  ;;  %v1820_v43 = vld [vmem:[%s1606_s24 + $0x188] sm:$0xff] }
  0x51   : > { %241 = vadd.xlane.f32.xlu0 %v240_v44  ;;  %3191 = vst [vmem:[#allocation44_spill] sm:$0xff] %v1787_v7  ;;  %v282_v44 = vadd.f32 %v1808_v33, %v1805_v26 }
  0x52   : > { %3192 = vst [vmem:[#allocation45_spill] sm:$0xff] %v1790_v8 }
  0x53   : > { %3193 = vst [vmem:[#allocation46_spill] sm:$0xff] %v1793_v15 }
  0x54   : > { %3194 = vst [vmem:[#allocation47_spill] sm:$0xff] %v1796_v16 }
  0x55   : > { %3195 = vst [vmem:[#allocation48_spill] sm:$0xff] %v1808_v33  ;;  %v1860_v33 = vld [vmem:[%s1606_s24 + $0x1f8] sm:$0xff] }
  0x56   : > { %3196 = vst [vmem:[#allocation49_spill] sm:$0xff] %v1811_v34 }
  0x57   : > { %256 = vadd.xlane.f32.xlu2 %v255_v51  ;;  %3197 = vst [vmem:[#allocation50_spill] sm:$0xff] %v1814_v35  ;;  %v279_v51 = vadd.f32 %v1814_v35, %v1811_v34  ;;  %v301_v35 = vmul.f32 %v1630_v6, %v1630_v6  ;;  %v1857_v34 = vld [vmem:[%s1606_s24 + $0x1f0] sm:$0xff]  ;;  %v307_v6 = vmul.f32 %v1646_v12, %v1646_v12 }
  0x58   : > { %253 = vadd.xlane.f32.xlu1 %v252_v52  ;;  %3198 = vst [vmem:[#allocation51_spill] sm:$0xff] %v1817_v42  ;;  %v276_v52 = vadd.f32 %v1820_v43, %v1817_v42 }
  0x59   : > { %250 = vadd.xlane.f32.xlu0 %v249_v53  ;;  %3199 = vst [vmem:[#allocation52_spill] sm:$0xff] %v1820_v43  ;;  %v1829_v53 = vld [vmem:[%s1606_s24 + $0x1d0] sm:$0xff] }
  0x5a   : > { %3200 = vst [vmem:[#allocation53_spill] sm:$0xff] %v1829_v53 }
  0x5b   : > { %3203 = vst [vmem:[#allocation56_spill] sm:$0xff] %v1857_v34 }
  0x5c   : > { %3204 = vst [vmem:[#allocation57_spill] sm:$0xff] %v1860_v33 }
  0x5f   : > { %265 = vadd.xlane.f32.xlu2 %v264_v60  ;;  %v1832_v60 = vld [vmem:[%s1606_s24 + $0x1d8] sm:$0xff] }
  0x60   : > { %262 = vadd.xlane.f32.xlu1 %v261_v61  ;;  %3201 = vst [vmem:[#allocation54_spill] sm:$0xff] %v1832_v60  ;;  %v1835_v61 = vld [vmem:[%s1606_s24 + $0x1c0] sm:$0xff] }
  0x61   : > { %259 = vadd.xlane.f32.xlu0 %v258_v62  ;;  %v1838_v62 = vld [vmem:[%s1606_s24 + $0x1c8] sm:$0xff] }
  0x62   : > { %3202 = vst [vmem:[#allocation55_spill] sm:$0xff] %v1838_v62 }
  0x67   : > { %274 = vadd.xlane.f32.xlu2 %v273_v17  ;;  %v1841_v17 = vld [vmem:[%s1606_s24 + $0x1b0] sm:$0xff] }
  0x68   : > { %271 = vadd.xlane.f32.xlu1 %v270_v24  ;;  %v1844_v24 = vld [vmem:[%s1606_s24 + $0x1b8] sm:$0xff] }
  0x69   : > { %268 = vadd.xlane.f32.xlu0 %v267_v25  ;;  %v291_v25 = vadd.f32 %v1832_v60, %v1829_v53  ;;  %v1863_v60 = vld [vmem:[%s1606_s24 + $0x1e0] sm:$0xff]  ;;  %v1866_v53 = vld [vmem:[%s1606_s24 + $0x1e8] sm:$0xff] }
  0x6f   : > { %283 = vadd.xlane.f32.xlu2 %v282_v44  ;;  %v288_v44 = vadd.f32 %v1838_v62, %v1835_v61 }
  0x70   : > { %280 = vadd.xlane.f32.xlu1 %v279_v51  ;;  %v285_v51 = vadd.f32 %v1844_v24, %v1841_v17 }
  0x71   : > { %277 = vadd.xlane.f32.xlu0 %v276_v52  ;;  %v300_v52 = vmul.f32 %v1627_v5, %v1627_v5  ;;  %v294_v5 = vadd.f32 %v1866_v53, %v1863_v60 }
  0x73   : > { %v364_v62 = vadd.f32 %v301_v35, %v300_v52  ;;  %v305_v35 = vmul.f32 %v1624_v4, %v1624_v4  ;;  %v302_v52 = vmul.f32 %v1649_v13, %v1649_v13  ;;  %v311_v13 = vmul.f32 %v1640_v10, %v1640_v10  ;;  %v3226_v10 = vld [vmem:[#allocation18_spill] sm:$0xff] }
  0x77   : > { %292 = vadd.xlane.f32.xlu2 %v291_v25  ;;  %v297_v25 = vadd.f32 %v1860_v33, %v1857_v34 }
  0x78   : > { %289 = vadd.xlane.f32.xlu1 %v288_v44  ;;  %v304_v44 = vmul.f32 %v1619_v2, %v1619_v2 }
  0x79   : > { %286 = vadd.xlane.f32.xlu0 %v285_v51  ;;  %v306_v51 = vmul.f32 %v1643_v11, %v1643_v11  ;;  %v310_v11 = vmul.f32 %v1637_v9, %v1637_v9 }
  0x7a   : > { %v370_v34 = vadd.f32 %v305_v35, %v304_v44 }
  0x7b   : > { %v373_v33 = vadd.f32 %v307_v6, %v306_v51  ;;  %v308_v6 = vmul.f32 %v1613_v0, %v1613_v0  ;;  %v379_v51 = vadd.f32 %v311_v13, %v310_v11  ;;  %v315_v11 = vmul.f32 %v1670_v21, %v1670_v21 }
  0x7f   : > { %365 = vadd.xlane.f32.xlu2 %v364_v62  ;;  %v303_v62 = vmul.f32 %v1652_v14, %v1652_v14 }
  0x80   : > { %298 = vadd.xlane.f32.xlu1 %v297_v25  ;;  %v312_v25 = vmul.f32 %v1673_v22, %v1673_v22 }
  0x81   : > { %295 = vadd.xlane.f32.xlu0 %v294_v5  ;;  %v367_v2 = vadd.f32 %v303_v62, %v302_v52  ;;  %v313_v5 = vmul.f32 %v1676_v23, %v1676_v23  ;;  %v316_v52 = vmul.f32 %v1661_v18, %v1661_v18  ;;  %v317_v62 = vmul.f32 %v1664_v19, %v1664_v19 }
  0x83   : > { %v382_v44 = vadd.f32 %v313_v5, %v312_v25  ;;  %v314_v25 = vmul.f32 %v1667_v20, %v1667_v20  ;;  %v388_v5 = vadd.f32 %v317_v62, %v316_v52  ;;  %v321_v52 = vmul.f32 %v1694_v30, %v1694_v30 }
  0x87   : > { %374 = vadd.xlane.f32.xlu2 %v373_v33  ;;  %v309_v33 = vmul.f32 %v1616_v1, %v1616_v1 }
  0x88   : > { %371 = vadd.xlane.f32.xlu1 %v370_v34  ;;  %v318_v34 = vmul.f32 %v1697_v31, %v1697_v31 }
  0x89   : > { %368 = vadd.xlane.f32.xlu0 %v367_v2  ;;  %v376_v35 = vadd.f32 %v309_v33, %v308_v6  ;;  %v319_v2 = vmul.f32 %v1700_v32, %v1700_v32  ;;  %v385_v6 = vadd.f32 %v315_v11, %v314_v25  ;;  %v322_v33 = vmul.f32 %v1685_v27, %v1685_v27 }
  0x8a   : > { %v328_v11 = vmul.f32 %v1709_v36, %v1709_v36 }
  0x8b   : > { %v391_v13 = vadd.f32 %v319_v2, %v318_v34  ;;  %v320_v34 = vmul.f32 %v1691_v29, %v1691_v29 }
  0x8d   : > { %v394_v25 = vadd.f32 %v321_v52, %v320_v34 }
  0x8f   : > { %383 = vadd.xlane.f32.xlu2 %v382_v44  ;;  %v324_v44 = vmul.f32 %v1721_v40, %v1721_v40 }
  0x90   : > { %380 = vadd.xlane.f32.xlu1 %v379_v51  ;;  %v325_v51 = vmul.f32 %v1724_v41, %v1724_v41  ;;  %v335_v41 = vmul.f32 %v1736_v46, %v1736_v46 }
  0x91   : > { %377 = vadd.xlane.f32.xlu0 %v376_v35  ;;  %v323_v35 = vmul.f32 %v1688_v28, %v1688_v28 }
  0x92   : > { %v400_v2 = vadd.f32 %v325_v51, %v324_v44  ;;  %v326_v44 = vmul.f32 %v1715_v38, %v1715_v38 }
  0x93   : > { %v397_v62 = vadd.f32 %v323_v35, %v322_v33  ;;  %v327_v33 = vmul.f32 %v1718_v39, %v1718_v39 }
  0x97   : > { %392 = vadd.xlane.f32.xlu2 %v391_v13  ;;  %v330_v13 = vmul.f32 %v1745_v49, %v1745_v49  ;;  %v337_v49 = vmul.f32 %v1772_v59, %v1772_v59 }
  0x98   : > { %389 = vadd.xlane.f32.xlu1 %v388_v5  ;;  %v331_v5 = vmul.f32 %v1748_v50, %v1748_v50  ;;  %v403_v50 = vadd.f32 %v327_v33, %v326_v44 }
  0x99   : > { %386 = vadd.xlane.f32.xlu0 %v385_v6  ;;  %v329_v6 = vmul.f32 %v1712_v37, %v1712_v37 }
  0x9a   : > { %v409_v52 = vadd.f32 %v331_v5, %v330_v13  ;;  %v332_v13 = vmul.f32 %v1739_v47, %v1739_v47 }
  0x9f   : > { %401 = vadd.xlane.f32.xlu2 %v400_v2  ;;  %v406_v2 = vadd.f32 %v329_v6, %v328_v11  ;;  %v333_v11 = vmul.f32 %v1742_v48, %v1742_v48  ;;  %v341_v48 = vmul.f32 %v1760_v55, %v1760_v55 }
  0xa0   : > { %398 = vadd.xlane.f32.xlu1 %v397_v62  ;;  %v334_v62 = vmul.f32 %v1733_v45, %v1733_v45 }
  0xa1   : > { %395 = vadd.xlane.f32.xlu0 %v394_v25  ;;  %v336_v25 = vmul.f32 %v1769_v58, %v1769_v58  ;;  %v412_v59 = vadd.f32 %v333_v11, %v332_v13  ;;  %v343_v58 = vmul.f32 %v1796_v16, %v1796_v16 }
  0xa2   : > { %v1932_v51 = vpop.xlane.xlu2 %217 }
  0xa3   : > { %v1934_v35 = vpop.xlane.xlu1 %211  ;;  %v418_v33 = vadd.f32 %v337_v49, %v336_v25  ;;  %v338_v49 = vmul.f32 %v1763_v56, %v1763_v56 }
  0xa4   : > { %v1936_v34 = vpop.xlane.xlu0 %205 }
  0xa7   : > { %410 = vadd.xlane.f32.xlu2 %v409_v52  ;;  %v415_v52 = vadd.f32 %v335_v41, %v334_v62  ;;  %v339_v41 = vmul.f32 %v1766_v57, %v1766_v57  ;;  %v347_v57 = vmul.f32 %v1784_v3, %v1784_v3  ;;  %v3206_v3 = vld [vmem:[#allocation49_spill] sm:$0xff] }
  0xa8   : > { %407 = vadd.xlane.f32.xlu1 %v406_v2  ;;  %v342_v2 = vmul.f32 %v1793_v15, %v1793_v15  ;;  %v349_v15 = vmul.f32 %v1820_v43, %v1820_v43 }
  0xa9   : > { %404 = vadd.xlane.f32.xlu0 %v403_v50  ;;  %v340_v50 = vmul.f32 %v1757_v54, %v1757_v54  ;;  %v421_v16 = vadd.f32 %v339_v41, %v338_v49 }
  0xaa   : > { %v1950_v5 = vpop.xlane.xlu2 %220  ;;  %v427_v11 = vadd.f32 %v343_v58, %v342_v2  ;;  %v344_v58 = vmul.f32 %v1787_v7, %v1787_v7 }
  0xab   : > { %v1952_v6 = vpop.xlane.xlu1 %214 }
  0xac   : > { %v1954_v44 = vpop.xlane.xlu0 %208 }
  0xaf   : > { %419 = vadd.xlane.f32.xlu2 %v418_v33  ;;  %v424_v33 = vadd.f32 %v341_v48, %v340_v50  ;;  %v345_v48 = vmul.f32 %v1790_v8, %v1790_v8  ;;  %v3205_v8 = vld [vmem:[#allocation48_spill] sm:$0xff] }
  0xb0   : > { %416 = vadd.xlane.f32.xlu1 %v415_v52  ;;  %v348_v52 = vmul.f32 %v1817_v42, %v1817_v42  ;;  %v355_v42 = vmul.f32 %v1844_v24, %v1844_v24  ;;  %v353_v7 = vmul.f32 %v3205_v8, %v3205_v8  ;;  %v360_v8 = vmul.f32 %v1863_v60, %v1863_v60 }
  0xb1   : > { %413 = vadd.xlane.f32.xlu0 %v412_v59  ;;  %v346_v59 = vmul.f32 %v1781_v63, %v1781_v63  ;;  %v430_v43 = vadd.f32 %v345_v48, %v344_v58 }
  0xb2   : > { %v1968_v62 = vpop.xlane.xlu2 %229  ;;  %v436_v41 = vadd.f32 %v349_v15, %v348_v52  ;;  %v350_v15 = vmul.f32 %v3206_v3, %v3206_v3  ;;  %v361_v3 = vmul.f32 %v1866_v53, %v1866_v53 }
  0xb3   : > { %v1970_v25 = vpop.xlane.xlu1 %226 }
  0xb4   : > { %v1972_v13 = vpop.xlane.xlu0 %223  ;;  %v454_v60 = vadd.f32 %v361_v3, %v360_v8 }
  0xb7   : > { %428 = vadd.xlane.f32.xlu2 %v427_v11  ;;  %v433_v11 = vadd.f32 %v347_v57, %v346_v59  ;;  %v3207_v57 = vld [vmem:[#allocation50_spill] sm:$0xff] }
  0xb8   : > { %425 = vadd.xlane.f32.xlu1 %v424_v33  ;;  %v354_v33 = vmul.f32 %v1841_v17, %v1841_v17  ;;  %v351_v59 = vmul.f32 %v3207_v57, %v3207_v57 }
  0xb9   : > { %422 = vadd.xlane.f32.xlu0 %v421_v16  ;;  %v352_v16 = vmul.f32 %v1805_v26, %v1805_v26 }
  0xba   : > { %v1986_v50 = vpop.xlane.xlu2 %238  ;;  %v445_v17 = vadd.f32 %v355_v42, %v354_v33  ;;  %v439_v24 = vadd.f32 %v351_v59, %v350_v15  ;;  %v356_v42 = vmul.f32 %v1835_v61, %v1835_v61 }
  0xbb   : > { %v1988_v2 = vpop.xlane.xlu1 %235  ;;  %v442_v48 = vadd.f32 %v353_v7, %v352_v16  ;;  %v3210_v7 = vld [vmem:[#allocation55_spill] sm:$0xff] }
  0xbc   : > { %v1990_v49 = vpop.xlane.xlu0 %232  ;;  %v357_v16 = vmul.f32 %v3210_v7, %v3210_v7 }
  0xbe   : > { %v448_v53 = vadd.f32 %v357_v16, %v356_v42  ;;  %v2047_v42 = vmul.f32 0.00390625, %v1932_v51 }
  0xbf   : > { %437 = vadd.xlane.f32.xlu2 %v436_v41 }
  0xc0   : > { %434 = vadd.xlane.f32.xlu1 %v433_v11  ;;  %v3209_v11 = vld [vmem:[#allocation54_spill] sm:$0xff]  ;;  %3215 = vst [vmem:[#allocation50_spill] sm:$0xff] %v2047_v42 }
  0xc1   : > { %431 = vadd.xlane.f32.xlu0 %v430_v43  ;;  %v3208_v43 = vld [vmem:[#allocation53_spill] sm:$0xff]  ;;  %v359_v57 = vmul.f32 %v3209_v11, %v3209_v11 }
  0xc2   : > { %v2004_v52 = vpop.xlane.xlu2 %247  ;;  %v358_v41 = vmul.f32 %v3208_v43, %v3208_v43  ;;  %v3212_v43 = vld [vmem:[#allocation57_spill] sm:$0xff] }
  0xc3   : > { %v2006_v26 = vpop.xlane.xlu1 %244  ;;  %v363_v61 = vmul.f32 %v3212_v43, %v3212_v43  ;;  %v2087_v43 = vmul.f32 0.00390625, %v1968_v62 }
  0xc4   : > { %v2008_v58 = vpop.xlane.xlu0 %241 }
  0xc5   : > { %v2191_v27 = vmul.f32 0.00390625, %v2008_v58 }
  0xc7   : > { %446 = vadd.xlane.f32.xlu2 %v445_v17  ;;  %v451_v17 = vadd.f32 %v359_v57, %v358_v41  ;;  %v2226_v29 = vmul.f32 %v2191_v27, %v2008_v58 }
  0xc8   : > { %443 = vadd.xlane.f32.xlu1 %v442_v48  ;;  %v3211_v48 = vld [vmem:[#allocation56_spill] sm:$0xff] }
  0xc9   : > { %440 = vadd.xlane.f32.xlu0 %v439_v24  ;;  %v362_v24 = vmul.f32 %v3211_v48, %v3211_v48  ;;  %v2064_v48 = vmul.f32 %v2047_v42, %v1932_v51  ;;  %v2098_v51 = vmul.f32 0.00390625, %v1970_v25  ;;  %v2111_v42 = vmul.f32 0.00390625, %v1972_v13 }
  0xca   : > { %v2022_v33 = vpop.xlane.xlu2 %256 }
  0xcb   : > { %v2024_v15 = vpop.xlane.xlu1 %253  ;;  %v457_v56 = vadd.f32 %v363_v61, %v362_v24  ;;  %3221 = vst [vmem:[#allocation58_spill] sm:$0xff] %v2064_v48  ;;  %v2067_v24 = vmul.f32 0.00390625, %v1952_v6  ;;  %v3223_v61 = vld [vmem:[#allocation12_spill] sm:$0xff]  ;;  %v2145_v12 = vmul.f32 %v2098_v51, %v1970_v25  ;;  %v2156_v14 = vmul.f32 %v2111_v42, %v1972_v13 }
  0xcc   : > { %v2026_v59 = vpop.xlane.xlu0 %250 }
  0xcd   : > { %v2108_v1 = vmul.f32 %v2067_v24, %v1952_v6  ;;  %v2126_v6 = vmul.f32 0.00390625, %v1986_v50 }
  0xcf   : > { %455 = vadd.xlane.f32.xlu2 %v454_v60  ;;  %v2167_v19 = vmul.f32 %v2126_v6, %v1986_v50  ;;  %v2200_v50 = vmul.f32 0.00390625, %v2022_v33 }
  0xd0   : > { %452 = vadd.xlane.f32.xlu1 %v451_v17  ;;  %v2054_v17 = vmul.f32 0.00390625, %v1934_v35 }
  0xd1   : > { %449 = vadd.xlane.f32.xlu0 %v448_v53  ;;  %v2060_v53 = vmul.f32 0.00390625, %v1950_v5  ;;  %3230 = vst [vmem:[#allocation59_spill] sm:$0xff] %v2200_v50 }
  0xd2   : > { %v2032_v11 = vpop.xlane.xlu2 %265  ;;  %3218 = vst [vmem:[#allocation55_spill] sm:$0xff] %v2054_v17 }
  0xd3   : > { %v2034_v7 = vpop.xlane.xlu1 %262  ;;  %3220 = vst [vmem:[#allocation57_spill] sm:$0xff] %v2060_v53  ;;  %v2095_v0 = vmul.f32 %v2060_v53, %v1950_v5  ;;  %v2148_v53 = vmul.f32 0.00390625, %v1990_v49 }
  0xd4   : > { %v2036_v63 = vpop.xlane.xlu0 %259  ;;  %v2242_v28 = vmul.f32 0.00390625, %v2034_v7 }
  0xd5   : > { %v2186_v25 = vmul.f32 %v2148_v53, %v1990_v49  ;;  %v2261_v38 = vmul.f32 0.00390625, %v2036_v63 }
  0xd6   : > { %3236 = vst [vmem:[#allocation63_spill] sm:$0xff] %v2242_v28 }
  0xd7   : > { %3239 = vst [vmem:[#allocation64_spill] sm:$0xff] %v2261_v38 }
  0xd9   : > { %458 = vadd.xlane.f32.xlu0 %v457_v56  ;;  %v2057_v56 = vmul.f32 0.00390625, %v1936_v34 }
  0xda   : > { %v2038_v8 = vpop.xlane.xlu2 %274 }
  0xdb   : > { %v2040_v41 = vpop.xlane.xlu1 %271  ;;  %3219 = vst [vmem:[#allocation56_spill] sm:$0xff] %v2057_v56 }
  0xdc   : > { %v2042_v3 = vpop.xlane.xlu0 %268  ;;  %v2287_v54 = vmul.f32 0.00390625, %v2040_v41 }
  0xdd   : > { %3213 = vst [vmem:[#allocation48_spill] sm:$0xff] %v2042_v3  ;;  %v492_v3 = vmul.f32 %v2057_v56, %v1936_v34  ;;  %v2134_v56 = vmul.f32 %v2087_v43, %v1968_v62  ;;  %v2170_v62 = vmul.f32 0.00390625, %v2006_v26 }
  0xde   : > { %3244 = vst [vmem:[#allocation67_spill] sm:$0xff] %v2287_v54 }
  0xdf   : > { %3229 = vst [vmem:[#allocation18_spill] sm:$0xff] %v2170_v62 }
  0xe2   : > { %v2044_v57 = vpop.xlane.xlu2 %283 }
  0xe3   : > { %3214 = vst [vmem:[#allocation49_spill] sm:$0xff] %v2044_v57  ;;  %v2049_v16 = vpop.xlane.xlu1 %280  ;;  %v3225_v57 = vld [vmem:[#allocation16_spill] sm:$0xff] }
  0xe4   : > { %3216 = vst [vmem:[#allocation53_spill] sm:$0xff] %v2049_v16  ;;  %v2051_v60 = vpop.xlane.xlu0 %277  ;;  %v2078_v16 = vmul.f32 0.00390625, %v1954_v44 }
  0xe5   : > { %3217 = vst [vmem:[#allocation54_spill] sm:$0xff] %v2051_v60  ;;  %v2075_v60 = vmul.f32 %v2054_v17, %v1934_v35  ;;  %v2137_v35 = vmul.f32 0.00390625, %v1988_v2 }
  0xe6   : > { %v2123_v4 = vmul.f32 %v2078_v16, %v1954_v44  ;;  %v2159_v44 = vmul.f32 0.00390625, %v2004_v52 }
  0xe7   : > { %3227 = vst [vmem:[#allocation12_spill] sm:$0xff] %v2137_v35  ;;  %v2178_v21 = vmul.f32 %v2137_v35, %v1988_v2  ;;  %v2212_v2 = vmul.f32 %v2170_v62, %v2006_v26 }
  0xe8   : > { %3228 = vst [vmem:[#allocation16_spill] sm:$0xff] %v2159_v44  ;;  %v2197_v34 = vmul.f32 %v2159_v44, %v2004_v52  ;;  %v2215_v52 = vmul.f32 0.00390625, %v2024_v15  ;;  %v2233_v44 = vmul.f32 0.00390625, %v2032_v11 }
  0xea   : > { %v2100_v48 = vpop.xlane.xlu2 %292  ;;  %3232 = vst [vmem:[#allocation61_spill] sm:$0xff] %v2215_v52  ;;  %v2248_v37 = vmul.f32 %v2215_v52, %v2024_v15  ;;  %v2269_v39 = vmul.f32 %v2233_v44, %v2032_v11  ;;  %v3246_v15 = vld [vmem:[#allocation48_spill] sm:$0xff] }
  0xeb   : > { %v2113_v5 = vpop.xlane.xlu1 %289 }
  0xec   : > { %v2115_v17 = vpop.xlane.xlu0 %286 }
  0xf2   : > { %v366_v9 = vpop.xlane.xlu2 %365 }
  0xf3   : > { %v2202_v30 = vpop.xlane.xlu1 %298  ;;  %v524_v49 = vsub.f32 %v366_v9, %v492_v3  ;;  %v2222_v3 = vmul.f32 0.00390625, %v2026_v59  ;;  %v2237_v9 = vmul.f32 %v2200_v50, %v2022_v33  ;;  %v2295_v50 = vmul.f32 %v2261_v38, %v2036_v63 }
  0xf4   : > { %3231 = vst [vmem:[#allocation60_spill] sm:$0xff] %v2202_v30  ;;  %v2204_v35 = vpop.xlane.xlu0 %295  ;;  %v3234_v30 = vld [vmem:[#allocation29_spill] sm:$0xff] }
  0xf5   : > { %3233 = vst [vmem:[#allocation62_spill] sm:$0xff] %v2222_v3  ;;  %v556_v13 = vmul.f32 0.003921569, %v524_v49  ;;  %v2256_v49 = vmul.f32 %v2222_v3, %v2026_v59 }
  0xf6   : > { %3235 = vst [vmem:[#allocation29_spill] sm:$0xff] %v2233_v44 }
  0xf7   : > { %v588_v58 = vmax.f32 %v556_v13, 0.0  ;;  %v2277_v13 = vmul.f32 %v2242_v28, %v2034_v7 }
  0xf9   : > { %v2263_v26 = vadd.f32 1e-05, %v588_v58  ;;  %3241 = vst [vmem:[#allocation65_spill] sm:$0xff] %v2277_v13  ;;  %v2280_v58 = vmul.f32 0.00390625, %v2038_v8  ;;  %v3266_v13 = vld [vmem:[#allocation58_spill] sm:$0xff] }
  0xfa   : > { %v375_v33 = vpop.xlane.xlu2 %374 }
  0xfb   : > { %3242 = vst [vmem:[#allocation66_spill] sm:$0xff] %v2280_v58  ;;  %1324 = vrsqrt.f32 %v2263_v26  ;;  %v372_v46 = vpop.xlane.xlu1 %371  ;;  %v527_v11 = vsub.f32 %v375_v33, %v2108_v1  ;;  %v2298_v1 = vmul.f32 0.00390625, %v3246_v15  ;;  %vm658_vm1 = vweird.f32 %v2263_v26 }
  0xfc   : > { %v369_v52 = vpop.xlane.xlu0 %368  ;;  %v526_v59 = vsub.f32 %v372_v46, %v2075_v60 }
  0xfd   : > { %v525_v7 = vsub.f32 %v369_v52, %v2123_v4  ;;  %3247 = vst [vmem:[#allocation48_spill] sm:$0xff] %v2298_v1  ;;  %v559_v33 = vmul.f32 0.003921569, %v527_v11  ;;  %v2306_v4 = vmul.f32 %v2280_v58, %v2038_v8  ;;  %v2314_v11 = vmul.f32 %v2287_v54, %v2040_v41  ;;  %v3257_v52 = vld [vmem:[#allocation49_spill] sm:$0xff] }
  0xfe   : > { %v558_v46 = vmul.f32 0.003921569, %v526_v59  ;;  %v2322_v63 = vmul.f32 %v2298_v1, %v3246_v15  ;;  %v2325_v55 = vmul.f32 0.00390625, %v3257_v52  ;;  %v3259_v41 = vld [vmem:[#allocation53_spill] sm:$0xff]  ;;  %v3262_v15 = vld [vmem:[#allocation54_spill] sm:$0xff] }
  0xff   : > { %v557_v60 = vmul.f32 0.003921569, %v525_v7  ;;  %3250 = vst [vmem:[#allocation68_spill] sm:$0xff] %v2306_v4  ;;  %v591_v28 = vmax.f32 %v559_v33, 0.0  ;;  %v2330_v44 = vmul.f32 0.00390625, %v3259_v41  ;;  %v2340_v54 = vmul.f32 0.00390625, %v3262_v15 }
 0x100   : > { %3253 = vst [vmem:[#allocation69_spill] sm:$0xff] %v2314_v11  ;;  %v590_v59 = vmax.f32 %v558_v46, 0.0  ;;  %v2362_v4 = vmul.f32 0.00390625, %v2113_v5 }
 0x101   : > { %v589_v7 = vmax.f32 %v557_v60, 0.0  ;;  %v1325_v3 = vpop.eup %1324  ;;  %3256 = vst [vmem:[#allocation70_spill] sm:$0xff] %v2322_v63  ;;  %v2327_v33 = vadd.f32 1e-05, %v591_v28  ;;  %v2366_v11 = vmul.f32 %v2340_v54, %v3262_v15 }
 0x102   : > { %3258 = vst [vmem:[#allocation49_spill] sm:$0xff] %v2325_v55  ;;  %v653_v45 = vmul.f32 %v1325_v3, %v2263_v26  ;;  %v2333_v46 = vadd.f32 1e-05, %v590_v59  ;;  %v384_v47 = vpop.xlane.xlu2 %383  ;;  %v2347_v59 = vmul.f32 0.00390625, %v2100_v48  ;;  %vm659_vm0 = vweird.f32 %v1325_v3 }
 0x103   : > { %3260 = vst [vmem:[#allocation53_spill] sm:$0xff] %v2330_v44  ;;  %v2335_v60 = vadd.f32 1e-05, %v589_v7  ;;  %1326 = vrsqrt.f32 %v2327_v33  ;;  %v381_v28 = vpop.xlane.xlu1 %380  ;;  %v530_v58 = vsub.f32 %v384_v47, %v2156_v14  ;;  %v2355_v14 = vmul.f32 %v2325_v55, %v3257_v52  ;;  %vm660_vm2 = vmor %vm658_vm1, %vm659_vm0 }
 0x104   : > { %3263 = vst [vmem:[#allocation54_spill] sm:$0xff] %v2340_v54  ;;  %v378_v62 = vpop.xlane.xlu0 %377  ;;  %v654_v7 = vmul.f32 %v1325_v3, %v653_v45  ;;  %1328 = vrsqrt.f32 %v2333_v46  ;;  %v529_v8 = vsub.f32 %v381_v28, %v2095_v0  ;;  %v2359_v47 = vmul.f32 %v2330_v44, %v3259_v41  ;;  %v3274_v44 = vld [vmem:[#allocation56_spill] sm:$0xff] }
 0x105   : > { %3265 = vst [vmem:[#allocation71_spill] sm:$0xff] %v2347_v59  ;;  %1330 = vrsqrt.f32 %v2335_v60  ;;  %v562_v38 = vmul.f32 0.003921569, %v530_v58  ;;  %v528_v63 = vsub.f32 %v378_v62, %v3266_v13  ;;  %v2371_v52 = vmul.f32 0.00390625, %v2115_v17 }
 0x106   : > { %3267 = vst [vmem:[#allocation58_spill] sm:$0xff] %v2355_v14  ;;  %v655_v45 = vmul.f32 0.5, %v654_v7  ;;  %v561_v0 = vmul.f32 0.003921569, %v529_v8  ;;  %v2377_v7 = vmul.f32 %v2347_v59, %v2100_v48  ;;  %v3275_v54 = vsub.f32 %v3223_v61, %v3274_v44 }
 0x107   : > { %3268 = vst [vmem:[#allocation72_spill] sm:$0xff] %v2359_v47  ;;  %v594_v58 = vmax.f32 %v562_v38, 0.0  ;;  %v560_v28 = vmul.f32 0.003921569, %v528_v63  ;;  %v2383_v63 = vmul.f32 %v2362_v4, %v2113_v5  ;;  %vm678_vm3 = vweird.f32 %v2333_v46 }
 0x108   : > { %3269 = vst [vmem:[#allocation73_spill] sm:$0xff] %v2362_v4  ;;  %v656_v55 = vsub.f32 1.5, %v655_v45  ;;  %v593_v15 = vmax.f32 %v561_v0, 0.0  ;;  %vm688_vm4 = vweird.f32 %v2327_v33  ;;  %vm668_vm9 = vweird.f32 %v2335_v60 }
 0x109   : > { %v1327_v41 = vpop.eup %1326  ;;  %3272 = vst [vmem:[#allocation74_spill] sm:$0xff] %v2377_v7  ;;  %v2379_v8 = vadd.f32 1e-05, %v594_v58  ;;  %v592_v0 = vmax.f32 %v560_v28, 0.0 }
 0x10a   : > { %v1329_v38 = vpop.eup %1328  ;;  %3273 = vst [vmem:[#allocation75_spill] sm:$0xff] %v2383_v63  ;;  %v657_v13 = vmul.f32 %v1325_v3, %v656_v55  ;;  %v683_v45 = vmul.f32 %v1327_v41, %v2327_v33  ;;  %v2390_v48 = vadd.f32 1e-05, %v593_v15  ;;  %v393_v59 = vpop.xlane.xlu2 %392  ;;  %v2395_v55 = vmul.f32 %v2371_v52, %v2115_v17  ;;  %v3276_v63 = vld [vmem:[#allocation13_spill] sm:$0xff] }
 0x10b   : > { %v2387_v62 = vpop.eup %1330  ;;  %v673_v1 = vmul.f32 %v1329_v38, %v2333_v46  ;;  %1332 = vrsqrt.f32 %v2379_v8  ;;  %v390_v58 = vpop.xlane.xlu1 %389  ;;  %v3277_v7 = vsub.f32 %v3276_v63, %v3274_v44  ;;  %v2414_v61 = vadd.f32 1e-05, %v592_v0 }
 0x10c   : > { %v661_v5 = vsel %vm660_vm2, %v1325_v3, %v657_v13  ;;  %v684_v26 = vmul.f32 %v1327_v41, %v683_v45  ;;  %v663_v4 = vmul.f32 %v2387_v62, %v2335_v60  ;;  %1334 = vrsqrt.f32 %v2390_v48  ;;  %v387_v14 = vpop.xlane.xlu0 %386 }
 0x10d   : > { %v1036_v15 = vmul.f32 %v3275_v54, %v661_v5  ;;  %v1037_v28 = vmul.f32 %v3277_v7, %v661_v5  ;;  %v674_v47 = vmul.f32 %v1329_v38, %v673_v1  ;;  %v532_v44 = vsub.f32 %v390_v58, %v2134_v56 }
 0x10e   : > { %v685_v17 = vmul.f32 0.5, %v684_v26  ;;  %v664_v3 = vmul.f32 %v2387_v62, %v663_v4  ;;  %v533_v1 = vsub.f32 %v393_v59, %v2186_v25  ;;  %vm689_vm5 = vweird.f32 %v1327_v41 }
 0x10f   : > { %1100 = vst [vmem:[%s2411_s17] sm:$0xff] %v1036_v15  ;;  %v675_v54 = vmul.f32 0.5, %v674_v47  ;;  %v531_v63 = vsub.f32 %v387_v14, %v2145_v12  ;;  %vm679_vm6 = vweird.f32 %v1329_v38  ;;  %1336 = vrsqrt.f32 %v2414_v61  ;;  %vm690_vm8 = vmor %vm688_vm4, %vm689_vm5 }
 0x110   : > { %1101 = vst [vmem:[%s2411_s17 + $0x8] sm:$0xff] %v1037_v28  ;;  %v686_v13 = vsub.f32 1.5, %v685_v17  ;;  %v665_v7 = vmul.f32 0.5, %v664_v3  ;;  %v564_v5 = vmul.f32 0.003921569, %v532_v44  ;;  %vm669_vm7 = vweird.f32 %v2387_v62  ;;  %vm680_vm10 = vmor %vm678_vm3, %vm679_vm6 }
 0x111   : > { %v2420_v4 = vpop.eup %1332  ;;  %v676_v45 = vsub.f32 1.5, %v675_v54  ;;  %v565_v14 = vmul.f32 0.003921569, %v533_v1  ;;  %vm708_vm11 = vweird.f32 %v2390_v48  ;;  %v563_v28 = vmul.f32 0.003921569, %v531_v63  ;;  %v3279_v54 = vld [vmem:[#allocation17_spill] sm:$0xff]  ;;  %vm670_vm12 = vmor %vm668_vm9, %vm669_vm7 }
 0x112   : > { %v687_v47 = vmul.f32 %v1327_v41, %v686_v13  ;;  %v666_v0 = vsub.f32 1.5, %v665_v7  ;;  %v713_v56 = vmul.f32 %v2420_v4, %v2379_v8  ;;  %v1335_v25 = vpop.eup %1334  ;;  %v596_v12 = vmax.f32 %v564_v5, 0.0  ;;  %v402_v1 = vpop.xlane.xlu2 %401  ;;  %v3281_v13 = vld [vmem:[#allocation10_spill] sm:$0xff]  ;;  %v3282_v7 = vld [vmem:[#allocation55_spill] sm:$0xff] }
 0x113   : > { %v677_v59 = vmul.f32 %v1329_v38, %v676_v45  ;;  %v703_v15 = vmul.f32 %v1335_v25, %v2390_v48  ;;  %v399_v17 = vpop.xlane.xlu1 %398  ;;  %v3278_v33 = vsub.f32 %v3225_v57, %v2067_v24  ;;  %v3280_v46 = vsub.f32 %v3279_v54, %v2067_v24  ;;  %v3287_v54 = vld [vmem:[#allocation19_spill] sm:$0xff] }
 0x114   : > { %v691_v58 = vsel %vm690_vm8, %v1327_v41, %v687_v47  ;;  %v667_v26 = vmul.f32 %v2387_v62, %v666_v0  ;;  %v714_v41 = vmul.f32 %v2420_v4, %v713_v56  ;;  %v3283_v63 = vsub.f32 %v3281_v13, %v3282_v7 }
 0x115   : > { %v681_v3 = vsel %vm680_vm10, %v1329_v38, %v677_v59  ;;  %v1042_v60 = vmul.f32 %v3278_v33, %v691_v58  ;;  %v1043_v44 = vmul.f32 %v3280_v46, %v691_v58  ;;  %v3284_v38 = vld [vmem:[#allocation11_spill] sm:$0xff]  ;;  %v704_v0 = vmul.f32 %v1335_v25, %v703_v15  ;;  %v2450_v24 = vpop.eup %1336  ;;  %v396_v46 = vpop.xlane.xlu0 %395 }
 0x116   : > { %v1040_v45 = vmul.f32 %v3283_v63, %v681_v3  ;;  %v3285_v5 = vsub.f32 %v3284_v38, %v3282_v7  ;;  %v671_v47 = vsel %vm670_vm12, %v2387_v62, %v667_v26  ;;  %v3286_v59 = vsub.f32 %v3226_v10, %v2078_v16 }
 0x117   : > { %1106 = vst [vmem:[%s2411_s17 + $0x30] sm:$0xff] %v1042_v60  ;;  %v715_v58 = vmul.f32 0.5, %v714_v41  ;;  %vm719_vm13 = vweird.f32 %v2420_v4  ;;  %v2457_v33 = vadd.f32 1e-05, %v596_v12  ;;  %v705_v26 = vmul.f32 0.5, %v704_v0  ;;  %v3291_v0 = vld [vmem:[#allocation14_spill] sm:$0xff] }
 0x118   : > { %v1041_v57 = vmul.f32 %v3285_v5, %v681_v3  ;;  %v1038_v56 = vmul.f32 %v3286_v59, %v671_v47  ;;  %1104 = vst [vmem:[%s2411_s17 + $0x20] sm:$0xff] %v1040_v45  ;;  %v3288_v3 = vsub.f32 %v3287_v54, %v2078_v16  ;;  %v693_v15 = vmul.f32 %v2450_v24, %v2414_v61 }
 0x119   : > { %v597_v60 = vmax.f32 %v565_v14, 0.0  ;;  %vm709_vm14 = vweird.f32 %v1335_v25  ;;  %v716_v10 = vsub.f32 1.5, %v715_v58  ;;  %1338 = vrsqrt.f32 %v2457_v33  ;;  %1107 = vst [vmem:[%s2411_s17 + $0x38] sm:$0xff] %v1043_v44  ;;  %v3294_v58 = vld [vmem:[#allocation15_spill] sm:$0xff] }
 0x11a   : > { %v1039_v62 = vmul.f32 %v3288_v3, %v671_v47  ;;  %1105 = vst [vmem:[%s2411_s17 + $0x28] sm:$0xff] %v1041_v57  ;;  %v595_v12 = vmax.f32 %v563_v28, 0.0  ;;  %v706_v41 = vsub.f32 1.5, %v705_v26  ;;  %v694_v13 = vmul.f32 %v2450_v24, %v693_v15  ;;  %vm710_vm1 = vmor %vm708_vm11, %vm709_vm14 }
 0x11b   : > { %v2469_v16 = vadd.f32 1e-05, %v597_v60  ;;  %v535_v7 = vsub.f32 %v399_v17, %v2167_v19  ;;  %1102 = vst [vmem:[%s2411_s17 + $0x10] sm:$0xff] %v1038_v56  ;;  %v717_v63 = vmul.f32 %v2420_v4, %v716_v10  ;;  %vm718_vm15 = vweird.f32 %v2379_v8  ;;  %v408_v57 = vpop.xlane.xlu1 %407 }
 0x11c   : > { %v2475_v14 = vadd.f32 1e-05, %v595_v12  ;;  %v536_v45 = vsub.f32 %v402_v1, %v2226_v29  ;;  %1103 = vst [vmem:[%s2411_s17 + $0x18] sm:$0xff] %v1039_v62  ;;  %v707_v38 = vmul.f32 %v1335_v25, %v706_v41  ;;  %vm720_vm0 = vmor %vm718_vm15, %vm719_vm13  ;;  %v695_v28 = vmul.f32 0.5, %v694_v13  ;;  %v411_v62 = vpop.xlane.xlu2 %410 }
 0x11d   : > { %1340 = vrsqrt.f32 %v2469_v16  ;;  %v534_v44 = vsub.f32 %v396_v46, %v2178_v21  ;;  %v721_v19 = vsel %vm720_vm0, %v2420_v4, %v717_v63  ;;  %vm699_vm2 = vweird.f32 %v2450_v24  ;;  %v3292_v4 = vld [vmem:[#allocation57_spill] sm:$0xff]  ;;  %v405_v63 = vpop.xlane.xlu0 %404 }
 0x11e   : > { %1342 = vrsqrt.f32 %v2475_v14  ;;  %v567_v29 = vmul.f32 0.003921569, %v535_v7  ;;  %v711_v8 = vsel %vm710_vm1, %v1335_v25, %v707_v38  ;;  %v3289_v17 = vsub.f32 %v1673_v22, %v2111_v42  ;;  %v3296_v38 = vld [vmem:[#allocation8_spill] sm:$0xff] }
 0x11f   : > { %v3290_v21 = vsub.f32 %v1676_v23, %v2111_v42  ;;  %v696_v48 = vsub.f32 1.5, %v695_v28  ;;  %v1339_v47 = vpop.eup %1338  ;;  %v3293_v59 = vsub.f32 %v3291_v0, %v3292_v4  ;;  %v3295_v54 = vsub.f32 %v3294_v58, %v3292_v4  ;;  %v3297_v28 = vld [vmem:[#allocation50_spill] sm:$0xff] }
 0x120   : > { %v1048_v1 = vmul.f32 %v3289_v17, %v721_v19  ;;  %v599_v3 = vmax.f32 %v567_v29, 0.0  ;;  %v568_v22 = vmul.f32 0.003921569, %v536_v45  ;;  %vm698_vm3 = vweird.f32 %v2414_v61  ;;  %v3299_v29 = vld [vmem:[#allocation9_spill] sm:$0xff] }
 0x121   : > { %v1049_v5 = vmul.f32 %v3290_v21, %v721_v19  ;;  %v1046_v56 = vmul.f32 %v3293_v59, %v711_v8  ;;  %v1047_v25 = vmul.f32 %v3295_v54, %v711_v8  ;;  %v697_v23 = vmul.f32 %v2450_v24, %v696_v48  ;;  %vm700_vm4 = vmor %vm698_vm3, %vm699_vm2 }
 0x122   : > { %1112 = vst [vmem:[%s2411_s17 + $0x60] sm:$0xff] %v1048_v1  ;;  %v733_v42 = vmul.f32 %v1339_v47, %v2457_v33  ;;  %v566_v26 = vmul.f32 0.003921569, %v534_v44  ;;  %v2506_v15 = vmul.f32 0.00390625, %v2204_v35  ;;  %v2511_v60 = vadd.f32 1e-05, %v599_v3 }
 0x123   : > { %1110 = vst [vmem:[%s2411_s17 + $0x50] sm:$0xff] %v1046_v56  ;;  %v600_v46 = vmax.f32 %v568_v22, 0.0  ;;  %v538_v10 = vsub.f32 %v408_v57, %v2197_v34  ;;  %v1341_v12 = vpop.eup %1340  ;;  %v701_v61 = vsel %vm700_vm4, %v2450_v24, %v697_v23  ;;  %v539_v7 = vsub.f32 %v411_v62, %v2256_v49  ;;  %v417_v3 = vpop.xlane.xlu1 %416 }
 0x124   : > { %1111 = vst [vmem:[%s2411_s17 + $0x58] sm:$0xff] %v1047_v25  ;;  %v734_v41 = vmul.f32 %v1339_v47, %v733_v42  ;;  %v598_v13 = vmax.f32 %v566_v26, 0.0  ;;  %v1343_v45 = vpop.eup %1342  ;;  %v3298_v44 = vsub.f32 %v3296_v38, %v3297_v28  ;;  %v3300_v34 = vsub.f32 %v3299_v29, %v3297_v28  ;;  %v420_v23 = vpop.xlane.xlu2 %419 }
 0x125   : > { %1113 = vst [vmem:[%s2411_s17 + $0x68] sm:$0xff] %v1049_v5  ;;  %vm738_vm5 = vweird.f32 %v2457_v33  ;;  %v743_v24 = vmul.f32 %v1341_v12, %v2469_v16  ;;  %vm739_vm6 = vweird.f32 %v1339_v47  ;;  %v723_v49 = vmul.f32 %v1343_v45, %v2475_v14 }
 0x126   : > { %v1044_v19 = vmul.f32 %v3298_v44, %v701_v61  ;;  %v1045_v8 = vmul.f32 %v3300_v34, %v701_v61  ;;  %v735_v17 = vmul.f32 0.5, %v734_v41  ;;  %1344 = vrsqrt.f32 %v2511_v60  ;;  %vm740_vm9 = vmor %vm738_vm5, %vm739_vm6 }
 0x127   : > { %v744_v1 = vmul.f32 %v1341_v12, %v743_v24  ;;  %v2529_v21 = vadd.f32 1e-05, %v600_v46  ;;  %v2531_v5 = vadd.f32 1e-05, %v598_v13  ;;  %v537_v48 = vsub.f32 %v405_v63, %v2212_v2  ;;  %v3302_v13 = vld [vmem:[#allocation20_spill] sm:$0xff] }
 0x128   : > { %1108 = vst [vmem:[%s2411_s17 + $0x40] sm:$0xff] %v1044_v19  ;;  %v736_v57 = vsub.f32 1.5, %v735_v17  ;;  %v724_v0 = vmul.f32 %v1343_v45, %v723_v49  ;;  %v570_v4 = vmul.f32 0.003921569, %v538_v10  ;;  %v571_v59 = vmul.f32 0.003921569, %v539_v7 }
 0x129   : > { %1109 = vst [vmem:[%s2411_s17 + $0x48] sm:$0xff] %v1045_v8  ;;  %v745_v56 = vmul.f32 0.5, %v744_v1  ;;  %vm748_vm7 = vweird.f32 %v2469_v16  ;;  %vm728_vm8 = vweird.f32 %v2475_v14  ;;  %1346 = vrsqrt.f32 %v2529_v21  ;;  %v3307_v1 = vld [vmem:[#allocation21_spill] sm:$0xff] }
 0x12a   : > { %v737_v58 = vmul.f32 %v1339_v47, %v736_v57  ;;  %v725_v54 = vmul.f32 0.5, %v724_v0  ;;  %1348 = vrsqrt.f32 %v2531_v5  ;;  %v602_v25 = vmax.f32 %v570_v4, 0.0 }
 0x12b   : > { %v746_v2 = vsub.f32 1.5, %v745_v56  ;;  %vm749_vm10 = vweird.f32 %v1341_v12  ;;  %v603_v22 = vmax.f32 %v571_v59, 0.0  ;;  %v569_v62 = vmul.f32 0.003921569, %v537_v48 }
 0x12c   : > { %v1345_v42 = vpop.eup %1344  ;;  %v741_v26 = vsel %vm740_vm9, %v1339_v47, %v737_v58  ;;  %v726_v46 = vsub.f32 1.5, %v725_v54  ;;  %vm729_vm11 = vweird.f32 %v1343_v45  ;;  %v2542_v10 = vadd.f32 1e-05, %v602_v25  ;;  %vm750_vm13 = vmor %vm748_vm7, %vm749_vm10  ;;  %v2593_v25 = vpop.xlane.xlu1 %425 }
 0x12d   : > { %v3301_v61 = vsub.f32 %v1661_v18, %v2087_v43  ;;  %v3303_v33 = vsub.f32 %v3302_v13, %v2087_v43  ;;  %v747_v63 = vmul.f32 %v1341_v12, %v746_v2  ;;  %v763_v38 = vmul.f32 %v1345_v42, %v2511_v60  ;;  %vm730_vm14 = vmor %vm728_vm8, %vm729_vm11  ;;  %v3309_v13 = vld [vmem:[#allocation22_spill] sm:$0xff] }
 0x12e   : > { %vm768_vm12 = vweird.f32 %v2511_v60  ;;  %v727_v47 = vmul.f32 %v1343_v45, %v726_v46  ;;  %1350 = vrsqrt.f32 %v2542_v10  ;;  %v541_v28 = vsub.f32 %v417_v3, %v2237_v9 }
 0x12f   : > { %v1052_v41 = vmul.f32 %v3301_v61, %v741_v26  ;;  %v1053_v7 = vmul.f32 %v3303_v33, %v741_v26  ;;  %v542_v18 = vsub.f32 %v420_v23, %v2295_v50  ;;  %v1347_v44 = vpop.eup %1346  ;;  %v751_v43 = vsel %vm750_vm13, %v1341_v12, %v747_v63  ;;  %v3311_v63 = vld [vmem:[#allocation23_spill] sm:$0xff] }
 0x130   : > { %v764_v19 = vmul.f32 %v1345_v42, %v763_v38  ;;  %v2561_v29 = vadd.f32 1e-05, %v603_v22  ;;  %v601_v16 = vmax.f32 %v569_v62, 0.0  ;;  %v2563_v34 = vpop.eup %1348  ;;  %v3304_v9 = vsub.f32 %v1697_v31, %v2148_v53  ;;  %v414_v31 = vpop.xlane.xlu0 %413 }
 0x131   : > { %1116 = vst [vmem:[%s2411_s17 + $0x80] sm:$0xff] %v1052_v41  ;;  %v3305_v12 = vsub.f32 %v1700_v32, %v2148_v53  ;;  %v731_v24 = vsel %vm730_vm14, %v1343_v45, %v727_v47  ;;  %v773_v14 = vmul.f32 %v1347_v44, %v2529_v21  ;;  %v3306_v17 = vsub.f32 %v1667_v20, %v2098_v51 }
 0x132   : > { %1117 = vst [vmem:[%s2411_s17 + $0x88] sm:$0xff] %v1053_v7  ;;  %v1054_v50 = vmul.f32 %v3304_v9, %v751_v43  ;;  %v3308_v48 = vsub.f32 %v3307_v1, %v2098_v51  ;;  %v765_v0 = vmul.f32 0.5, %v764_v19  ;;  %vm778_vm15 = vweird.f32 %v2529_v21  ;;  %v429_v19 = vpop.xlane.xlu2 %428 }
 0x133   : > { %v1055_v8 = vmul.f32 %v3305_v12, %v751_v43  ;;  %v1050_v49 = vmul.f32 %v3306_v17, %v731_v24  ;;  %v774_v4 = vmul.f32 %v1347_v44, %v773_v14  ;;  %v753_v32 = vmul.f32 %v2563_v34, %v2531_v5 }
 0x134   : > { %v1051_v57 = vmul.f32 %v3308_v48, %v731_v24  ;;  %1118 = vst [vmem:[%s2411_s17 + $0x90] sm:$0xff] %v1054_v50  ;;  %vm758_vm0 = vweird.f32 %v2531_v5  ;;  %1352 = vrsqrt.f32 %v2561_v29  ;;  %v766_v20 = vsub.f32 1.5, %v765_v0  ;;  %v2588_v45 = vpop.eup %1350  ;;  %v3318_v5 = vld [vmem:[#allocation25_spill] sm:$0xff] }
 0x135   : > { %1119 = vst [vmem:[%s2411_s17 + $0x98] sm:$0xff] %v1055_v8  ;;  %vm769_vm1 = vweird.f32 %v1345_v42  ;;  %v2586_v53 = vadd.f32 1e-05, %v601_v16  ;;  %v573_v51 = vmul.f32 0.003921569, %v541_v28  ;;  %v775_v59 = vmul.f32 0.5, %v774_v4 }
 0x136   : > { %1114 = vst [vmem:[%s2411_s17 + $0x70] sm:$0xff] %v1050_v49  ;;  %v754_v56 = vmul.f32 %v2563_v34, %v753_v32  ;;  %v574_v58 = vmul.f32 0.003921569, %v542_v18  ;;  %v540_v54 = vsub.f32 %v414_v31, %v2248_v37  ;;  %v767_v3 = vmul.f32 %v1345_v42, %v766_v20  ;;  %vm770_vm3 = vmor %vm768_vm12, %vm769_vm1  ;;  %v2658_v32 = vpop.xlane.xlu1 %434 }
 0x137   : > { %1115 = vst [vmem:[%s2411_s17 + $0x78] sm:$0xff] %v1051_v57  ;;  %vm779_vm2 = vweird.f32 %v1347_v44  ;;  %v793_v2 = vmul.f32 %v2588_v45, %v2542_v10  ;;  %1354 = vrsqrt.f32 %v2586_v53  ;;  %v776_v22 = vsub.f32 1.5, %v775_v59 }
 0x138   : > { %v755_v62 = vmul.f32 0.5, %v754_v56  ;;  %vm759_vm4 = vweird.f32 %v2563_v34  ;;  %v605_v23 = vmax.f32 %v573_v51, 0.0  ;;  %v771_v37 = vsel %vm770_vm3, %v1345_v42, %v767_v3  ;;  %vm780_vm5 = vmor %vm778_vm15, %vm779_vm2  ;;  %v423_v4 = vpop.xlane.xlu0 %422 }
 0x139   : > { %v794_v26 = vmul.f32 %v2588_v45, %v793_v2  ;;  %v606_v46 = vmax.f32 %v574_v58, 0.0  ;;  %v572_v61 = vmul.f32 0.003921569, %v540_v54  ;;  %v3310_v33 = vsub.f32 %v3309_v13, %v2126_v6  ;;  %vm760_vm7 = vmor %vm758_vm0, %vm759_vm4  ;;  %v3320_v58 = vld [vmem:[#allocation16_spill] sm:$0xff]  ;;  %v3322_v2 = vld [vmem:[#allocation26_spill] sm:$0xff] }
 0x13a   : > { %v2604_v41 = vpop.eup %1352  ;;  %v3312_v60 = vsub.f32 %v3311_v63, %v2126_v6  ;;  %v777_v47 = vmul.f32 %v1347_v44, %v776_v22  ;;  %v756_v28 = vsub.f32 1.5, %v755_v62  ;;  %vm799_vm6 = vweird.f32 %v2588_v45 }
 0x13b   : > { %v1058_v7 = vmul.f32 %v3310_v33, %v771_v37  ;;  %v795_v42 = vmul.f32 0.5, %v794_v26  ;;  %v803_v18 = vmul.f32 %v2604_v41, %v2561_v29  ;;  %v2618_v43 = vadd.f32 1e-05, %v605_v23 }
 0x13c   : > { %v1059_v38 = vmul.f32 %v3312_v60, %v771_v37  ;;  %v781_v6 = vsel %vm780_vm5, %v1347_v44, %v777_v47  ;;  %v757_v16 = vmul.f32 %v2563_v34, %v756_v28  ;;  %v2622_v9 = vadd.f32 1e-05, %v606_v46  ;;  %v3324_v37 = vld [vmem:[#allocation70_spill] sm:$0xff]  ;;  %v438_v60 = vpop.xlane.xlu2 %437 }
 0x13d   : > { %1122 = vst [vmem:[%s2411_s17 + $0xb0] sm:$0xff] %v1058_v7  ;;  %v604_v50 = vmax.f32 %v572_v61, 0.0  ;;  %v2624_v12 = vpop.eup %1354  ;;  %v3313_v21 = vsub.f32 %v1721_v40, %v2191_v27  ;;  %v3314_v24 = vsub.f32 %v3234_v30, %v2191_v27  ;;  %v796_v44 = vsub.f32 1.5, %v795_v42  ;;  %v3315_v27 = vld [vmem:[#allocation24_spill] sm:$0xff]  ;;  %v3325_v61 = vld [vmem:[#allocation65_spill] sm:$0xff]  ;;  %v3326_v47 = vld [vmem:[#allocation34_spill] sm:$0xff] }
 0x13e   : > { %1123 = vst [vmem:[%s2411_s17 + $0xb8] sm:$0xff] %v1059_v38  ;;  %v804_v17 = vmul.f32 %v2604_v41, %v803_v18  ;;  %v761_v49 = vsel %vm760_vm7, %v2563_v34, %v757_v16  ;;  %vm798_vm8 = vweird.f32 %v2542_v10  ;;  %v783_v40 = vmul.f32 %v2624_v12, %v2586_v53  ;;  %v3316_v30 = vld [vmem:[#allocation12_spill] sm:$0xff]  ;;  %v3329_v18 = vld [vmem:[#allocation35_spill] sm:$0xff] }
 0x13f   : > { %v1060_v8 = vmul.f32 %v3313_v21, %v781_v6  ;;  %v1061_v14 = vmul.f32 %v3314_v24, %v781_v6  ;;  %1356 = vrsqrt.f32 %v2618_v43  ;;  %v3317_v1 = vsub.f32 %v3315_v27, %v3316_v30  ;;  %vm800_vm9 = vmor %vm798_vm8, %vm799_vm6  ;;  %v3331_v24 = vld [vmem:[#allocation68_spill] sm:$0xff]  ;;  %v3332_v27 = vld [vmem:[#allocation27_spill] sm:$0xff] }
 0x140   : > { %v3319_v57 = vsub.f32 %v3318_v5, %v3316_v30  ;;  %v797_v34 = vmul.f32 %v2588_v45, %v796_v44  ;;  %v805_v31 = vmul.f32 0.5, %v804_v17  ;;  %vm808_vm10 = vweird.f32 %v2561_v29  ;;  %v3327_v29 = vld [vmem:[#allocation62_spill] sm:$0xff]  ;;  %v3335_v5 = vld [vmem:[#allocation28_spill] sm:$0xff] }
 0x141   : > { %1124 = vst [vmem:[%s2411_s17 + $0xc0] sm:$0xff] %v1060_v8  ;;  %v1056_v48 = vmul.f32 %v3317_v1, %v761_v49  ;;  %vm809_vm11 = vweird.f32 %v2604_v41  ;;  %v784_v10 = vmul.f32 %v2624_v12, %v783_v40  ;;  %1358 = vrsqrt.f32 %v2622_v9  ;;  %v3333_v30 = vld [vmem:[#allocation18_spill] sm:$0xff] }
 0x142   : > { %v1057_v0 = vmul.f32 %v3319_v57, %v761_v49  ;;  %1125 = vst [vmem:[%s2411_s17 + $0xc8] sm:$0xff] %v1061_v14  ;;  %v801_v20 = vsel %vm800_vm9, %v2588_v45, %v797_v34  ;;  %v806_v51 = vsub.f32 1.5, %v805_v31  ;;  %v2662_v59 = vadd.f32 1e-05, %v604_v50  ;;  %vm810_vm13 = vmor %vm808_vm10, %vm809_vm11 }
 0x143   : > { %1120 = vst [vmem:[%s2411_s17 + $0xa0] sm:$0xff] %v1056_v48  ;;  %v544_v56 = vsub.f32 %v2593_v25, %v2269_v39  ;;  %v3321_v54 = vsub.f32 %v1709_v36, %v3320_v58  ;;  %v3323_v22 = vsub.f32 %v3322_v2, %v3320_v58  ;;  %v785_v23 = vmul.f32 0.5, %v784_v10  ;;  %v444_v10 = vpop.xlane.xlu1 %443  ;;  %v3337_v2 = vld [vmem:[#allocation69_spill] sm:$0xff] }
 0x144   : > { %1121 = vst [vmem:[%s2411_s17 + $0xa8] sm:$0xff] %v1057_v0  ;;  %v545_v26 = vsub.f32 %v429_v19, %v3324_v37  ;;  %v807_v45 = vmul.f32 %v2604_v41, %v806_v51  ;;  %vm788_vm12 = vweird.f32 %v2586_v53  ;;  %1360 = vrsqrt.f32 %v2662_v59 }
 0x145   : > { %v1064_v3 = vmul.f32 %v3321_v54, %v801_v20  ;;  %v1065_v62 = vmul.f32 %v3323_v22, %v801_v20  ;;  %v576_v39 = vmul.f32 0.003921569, %v544_v56  ;;  %v1357_v25 = vpop.eup %1356  ;;  %v786_v36 = vsub.f32 1.5, %v785_v23 }
 0x146   : > { %vm789_vm14 = vweird.f32 %v2624_v12  ;;  %v577_v46 = vmul.f32 0.003921569, %v545_v26  ;;  %v543_v13 = vsub.f32 %v423_v4, %v3325_v61  ;;  %v811_v33 = vsel %vm810_vm13, %v2604_v41, %v807_v45 }
 0x147   : > { %1128 = vst [vmem:[%s2411_s17 + $0xe0] sm:$0xff] %v1064_v3  ;;  %v823_v7 = vmul.f32 %v1357_v25, %v2618_v43  ;;  %vm828_vm15 = vweird.f32 %v2618_v43  ;;  %v608_v63 = vmax.f32 %v576_v39, 0.0  ;;  %v1359_v38 = vpop.eup %1358  ;;  %v3328_v28 = vsub.f32 %v3326_v47, %v3327_v29  ;;  %vm790_vm0 = vmor %vm788_vm12, %vm789_vm14 }
 0x148   : > { %1129 = vst [vmem:[%s2411_s17 + $0xe8] sm:$0xff] %v1065_v62  ;;  %v3330_v19 = vsub.f32 %v3329_v18, %v3327_v29  ;;  %v787_v16 = vmul.f32 %v2624_v12, %v786_v36  ;;  %v609_v41 = vmax.f32 %v577_v46, 0.0  ;;  %v833_v21 = vmul.f32 %v1359_v38, %v2622_v9  ;;  %v3338_v62 = vld [vmem:[#allocation58_spill] sm:$0xff]  ;;  %v3342_v29 = vld [vmem:[#allocation31_spill] sm:$0xff]  ;;  %v3344_v18 = vld [vmem:[#allocation60_spill] sm:$0xff] }
 0x149   : > { %v1066_v42 = vmul.f32 %v3328_v28, %v811_v33  ;;  %v824_v50 = vmul.f32 %v1357_v25, %v823_v7  ;;  %vm838_vm1 = vweird.f32 %v2622_v9  ;;  %v2699_v8 = vadd.f32 1e-05, %v608_v63  ;;  %v3339_v7 = vld [vmem:[#allocation30_spill] sm:$0xff]  ;;  %v3340_v63 = vld [vmem:[#allocation59_spill] sm:$0xff] }
 0x14a   : > { %v1067_v6 = vmul.f32 %v3330_v19, %v811_v33  ;;  %v547_v14 = vsub.f32 %v2658_v32, %v3331_v24  ;;  %v791_v44 = vsel %vm790_vm0, %v2624_v12, %v787_v16  ;;  %v2705_v17 = vadd.f32 1e-05, %v609_v41  ;;  %v1361_v40 = vpop.eup %1360  ;;  %v3345_v41 = vld [vmem:[#allocation40_spill] sm:$0xff]  ;;  %v3348_v24 = vld [vmem:[#allocation41_spill] sm:$0xff] }
 0x14b   : > { %1130 = vst [vmem:[%s2411_s17 + $0xf0] sm:$0xff] %v1066_v42  ;;  %v575_v49 = vmul.f32 0.003921569, %v543_v13  ;;  %v548_v53 = vsub.f32 %v438_v60, %v2366_v11  ;;  %v3334_v1 = vsub.f32 %v3332_v27, %v3333_v30  ;;  %v3336_v57 = vsub.f32 %v3335_v5, %v3333_v30  ;;  %v432_v11 = vpop.xlane.xlu0 %431 }
 0x14c   : > { %1131 = vst [vmem:[%s2411_s17 + $0xf8] sm:$0xff] %v1067_v6  ;;  %v825_v34 = vmul.f32 0.5, %v824_v50  ;;  %v834_v31 = vmul.f32 %v1359_v38, %v833_v21  ;;  %vm829_vm2 = vweird.f32 %v1357_v25  ;;  %vm839_vm3 = vweird.f32 %v1359_v38  ;;  %v3346_v50 = vld [vmem:[#allocation64_spill] sm:$0xff] }
 0x14d   : > { %v1062_v48 = vmul.f32 %v3334_v1, %v791_v44  ;;  %v1063_v0 = vmul.f32 %v3336_v57, %v791_v44  ;;  %v813_v12 = vmul.f32 %v1361_v40, %v2662_v59  ;;  %1362 = vrsqrt.f32 %v2699_v8  ;;  %vm830_vm5 = vmor %vm828_vm15, %vm829_vm2 }
 0x14e   : > { %v826_v4 = vsub.f32 1.5, %v825_v34  ;;  %v835_v32 = vmul.f32 0.5, %v834_v31  ;;  %vm819_vm4 = vweird.f32 %v1361_v40  ;;  %1364 = vrsqrt.f32 %v2705_v17  ;;  %vm840_vm6 = vmor %vm838_vm1, %vm839_vm3  ;;  %v3350_v34 = vld [vmem:[#allocation32_spill] sm:$0xff] }
 0x14f   : > { %1126 = vst [vmem:[%s2411_s17 + $0xd0] sm:$0xff] %v1062_v48  ;;  %v814_v20 = vmul.f32 %v1361_v40, %v813_v12  ;;  %v607_v51 = vmax.f32 %v575_v49, 0.0  ;;  %v579_v56 = vmul.f32 0.003921569, %v547_v14  ;;  %v580_v58 = vmul.f32 0.003921569, %v548_v53 }
 0x150   : > { %1127 = vst [vmem:[%s2411_s17 + $0xd8] sm:$0xff] %v1063_v0  ;;  %v827_v54 = vmul.f32 %v1357_v25, %v826_v4  ;;  %v836_v3 = vsub.f32 1.5, %v835_v32  ;;  %v546_v22 = vsub.f32 %v432_v11, %v3337_v2  ;;  %v550_v23 = vsub.f32 %v444_v10, %v3338_v62  ;;  %v447_v0 = vpop.xlane.xlu2 %446  ;;  %v3353_v11 = vld [vmem:[#allocation33_spill] sm:$0xff]  ;;  %v3355_v62 = vld [vmem:[#allocation72_spill] sm:$0xff] }
 0x151   : > { %v815_v37 = vmul.f32 0.5, %v814_v20  ;;  %v2725_v26 = vadd.f32 1e-05, %v607_v51  ;;  %v611_v45 = vmax.f32 %v579_v56, 0.0  ;;  %v612_v39 = vmax.f32 %v580_v58, 0.0 }
 0x152   : > { %v831_v36 = vsel %vm830_vm5, %v1357_v25, %v827_v54  ;;  %v837_v46 = vmul.f32 %v1359_v38, %v836_v3  ;;  %v578_v61 = vmul.f32 0.003921569, %v546_v22  ;;  %v582_v13 = vmul.f32 0.003921569, %v550_v23 }
 0x153   : > { %v1363_v33 = vpop.eup %1362  ;;  %v3341_v60 = vsub.f32 %v3339_v7, %v3340_v63  ;;  %v3343_v28 = vsub.f32 %v3342_v29, %v3340_v63  ;;  %v816_v42 = vsub.f32 1.5, %v815_v37  ;;  %1366 = vrsqrt.f32 %v2725_v26  ;;  %v453_v37 = vpop.xlane.xlu1 %452  ;;  %v3356_v7 = vld [vmem:[#allocation74_spill] sm:$0xff] }
 0x154   : > { %v2737_v25 = vpop.eup %1364  ;;  %v2740_v19 = vmul.f32 0.00390625, %v3344_v18  ;;  %v841_v6 = vsel %vm840_vm6, %v1359_v38, %v837_v46  ;;  %vm818_vm7 = vweird.f32 %v2662_v59  ;;  %v853_v16 = vmul.f32 %v1363_v33, %v2699_v8 }
 0x155   : > { %v1070_v47 = vmul.f32 %v3341_v60, %v831_v36  ;;  %v1071_v43 = vmul.f32 %v3343_v28, %v831_v36  ;;  %v3347_v21 = vsub.f32 %v3345_v41, %v3346_v50  ;;  %v3349_v14 = vsub.f32 %v3348_v24, %v3346_v50  ;;  %vm820_vm8 = vmor %vm818_vm7, %vm819_vm4  ;;  %v3357_v60 = vld [vmem:[#allocation36_spill] sm:$0xff]  ;;  %v3362_v41 = vld [vmem:[#allocation46_spill] sm:$0xff] }
 0x156   : > { %v817_v49 = vmul.f32 %v1361_v40, %v816_v42  ;;  %v863_v53 = vmul.f32 %v2737_v25, %v2705_v17  ;;  %v2755_v38 = vmul.f32 %v2506_v15, %v2204_v35  ;;  %v854_v59 = vmul.f32 %v1363_v33, %v853_v16  ;;  %v3351_v35 = vld [vmem:[#allocation61_spill] sm:$0xff]  ;;  %v3363_v50 = vld [vmem:[#allocation48_spill] sm:$0xff]  ;;  %v3365_v24 = vld [vmem:[#allocation47_spill] sm:$0xff] }
 0x157   : > { %1134 = vst [vmem:[%s2411_s17 + $0x110] sm:$0xff] %v1070_v47  ;;  %v1072_v9 = vmul.f32 %v3347_v21, %v841_v6  ;;  %v1073_v44 = vmul.f32 %v3349_v14, %v841_v6  ;;  %v2759_v27 = vadd.f32 1e-05, %v611_v45  ;;  %v2761_v30 = vadd.f32 1e-05, %v612_v39  ;;  %v3358_v47 = vld [vmem:[#allocation29_spill] sm:$0xff] }
 0x158   : > { %1135 = vst [vmem:[%s2411_s17 + $0x118] sm:$0xff] %v1071_v43  ;;  %v821_v1 = vsel %vm820_vm8, %v1361_v40, %v817_v49  ;;  %v864_v48 = vmul.f32 %v2737_v25, %v863_v53  ;;  %v610_v5 = vmax.f32 %v578_v61, 0.0  ;;  %v614_v57 = vmax.f32 %v582_v13, 0.0  ;;  %v441_v40 = vpop.xlane.xlu0 %440  ;;  %v3360_v43 = vld [vmem:[#allocation37_spill] sm:$0xff] }
 0x159   : > { %1136 = vst [vmem:[%s2411_s17 + $0x120] sm:$0xff] %v1072_v9  ;;  %v3352_v31 = vsub.f32 %v3350_v34, %v3351_v35  ;;  %v3354_v10 = vsub.f32 %v3353_v11, %v3351_v35  ;;  %v855_v32 = vmul.f32 0.5, %v854_v59  ;;  %1368 = vrsqrt.f32 %v2759_v27  ;;  %v2773_v20 = vpop.eup %1366 }
 0x15a   : > { %1137 = vst [vmem:[%s2411_s17 + $0x128] sm:$0xff] %v1073_v44  ;;  %vm858_vm9 = vweird.f32 %v2699_v8  ;;  %vm859_vm10 = vweird.f32 %v1363_v33  ;;  %v865_v51 = vmul.f32 0.5, %v864_v48  ;;  %1370 = vrsqrt.f32 %v2761_v30 }
 0x15b   : > { %v1068_v12 = vmul.f32 %v3352_v31, %v821_v1  ;;  %v1069_v4 = vmul.f32 %v3354_v10, %v821_v1  ;;  %v856_v56 = vsub.f32 1.5, %v855_v32  ;;  %vm869_vm11 = vweird.f32 %v2737_v25  ;;  %vm860_vm13 = vmor %vm858_vm9, %vm859_vm10  ;;  %v456_v1 = vpop.xlane.xlu2 %455 }
 0x15c   : > { %v843_v58 = vmul.f32 %v2773_v20, %v2725_v26  ;;  %v2781_v54 = vadd.f32 1e-05, %v610_v5  ;;  %v866_v3 = vsub.f32 1.5, %v865_v51  ;;  %v2784_v2 = vadd.f32 1e-05, %v614_v57  ;;  %v3368_v51 = vld [vmem:[#allocation63_spill] sm:$0xff] }
 0x15d   : > { %1132 = vst [vmem:[%s2411_s17 + $0x100] sm:$0xff] %v1068_v12  ;;  %v551_v22 = vsub.f32 %v447_v0, %v2395_v55  ;;  %v549_v23 = vsub.f32 %v441_v40, %v3355_v62  ;;  %v857_v45 = vmul.f32 %v1363_v33, %v856_v56  ;;  %vm868_vm12 = vweird.f32 %v2705_v17  ;;  %v3367_v40 = vld [vmem:[#allocation38_spill] sm:$0xff] }
 0x15e   : > { %1133 = vst [vmem:[%s2411_s17 + $0x108] sm:$0xff] %v1069_v4  ;;  %v844_v39 = vmul.f32 %v2773_v20, %v843_v58  ;;  %1372 = vrsqrt.f32 %v2781_v54  ;;  %v867_v36 = vmul.f32 %v2737_v25, %v866_v3  ;;  %vm848_vm14 = vweird.f32 %v2725_v26  ;;  %vm870_vm15 = vmor %vm868_vm12, %vm869_vm11  ;;  %v3370_v3 = vld [vmem:[#allocation39_spill] sm:$0xff] }
 0x15f   : > { %1374 = vrsqrt.f32 %v2784_v2  ;;  %v583_v55 = vmul.f32 0.003921569, %v551_v22  ;;  %v2797_v46 = vpop.eup %1368  ;;  %v861_v61 = vsel %vm860_vm13, %v1363_v33, %v857_v45  ;;  %v581_v13 = vmul.f32 0.003921569, %v549_v23 }
 0x160   : > { %v845_v17 = vmul.f32 0.5, %v844_v39  ;;  %v553_v63 = vsub.f32 %v453_v37, %v3356_v7  ;;  %v2802_v8 = vpop.eup %1370  ;;  %v3359_v29 = vsub.f32 %v3357_v60, %v3358_v47  ;;  %v3361_v42 = vsub.f32 %v3360_v43, %v3358_v47  ;;  %v450_v32 = vpop.xlane.xlu0 %449  ;;  %v3372_v7 = vld [vmem:[#allocation75_spill] sm:$0xff] }
 0x161   : > { %v871_v33 = vsel %vm870_vm15, %v2737_v25, %v867_v36  ;;  %v883_v16 = vmul.f32 %v2797_v46, %v2759_v27  ;;  %vm888_vm0 = vweird.f32 %v2759_v27  ;;  %v3364_v21 = vsub.f32 %v3362_v41, %v3363_v50  ;;  %v3376_v27 = vld [vmem:[#allocation43_spill] sm:$0xff] }
 0x162   : > { %v1076_v28 = vmul.f32 %v3359_v29, %v861_v61  ;;  %v1077_v6 = vmul.f32 %v3361_v42, %v861_v61  ;;  %v3366_v14 = vsub.f32 %v3365_v24, %v3363_v50  ;;  %v846_v49 = vsub.f32 1.5, %v845_v17  ;;  %v3373_v29 = vld [vmem:[#allocation42_spill] sm:$0xff] }
 0x163   : > { %v1078_v9 = vmul.f32 %v3364_v21, %v871_v33  ;;  %vm849_vm1 = vweird.f32 %v2773_v20  ;;  %v884_v25 = vmul.f32 %v2797_v46, %v883_v16  ;;  %v893_v53 = vmul.f32 %v2802_v8, %v2761_v30 }
 0x164   : > { %v1079_v44 = vmul.f32 %v3366_v14, %v871_v33  ;;  %1140 = vst [vmem:[%s2411_s17 + $0x140] sm:$0xff] %v1076_v28  ;;  %vm898_vm2 = vweird.f32 %v2761_v30  ;;  %v615_v59 = vmax.f32 %v583_v55, 0.0  ;;  %v2826_v48 = vpop.eup %1372  ;;  %v847_v5 = vmul.f32 %v2773_v20, %v846_v49  ;;  %vm850_vm5 = vmor %vm848_vm14, %vm849_vm1  ;;  %v3374_v28 = vld [vmem:[#allocation66_spill] sm:$0xff]  ;;  %v3378_v14 = vld [vmem:[#allocation51_spill] sm:$0xff] }
 0x165   : > { %1141 = vst [vmem:[%s2411_s17 + $0x148] sm:$0xff] %v1077_v6  ;;  %vm889_vm3 = vweird.f32 %v2797_v46  ;;  %vm899_vm4 = vweird.f32 %v2802_v8  ;;  %v613_v57 = vmax.f32 %v581_v13, 0.0  ;;  %v2832_v0 = vpop.eup %1374  ;;  %v885_v34 = vmul.f32 0.5, %v884_v25  ;;  %v3381_v30 = vld [vmem:[#allocation52_spill] sm:$0xff] }
 0x166   : > { %1142 = vst [vmem:[%s2411_s17 + $0x150] sm:$0xff] %v1078_v9  ;;  %v894_v35 = vmul.f32 %v2802_v8, %v893_v53  ;;  %v873_v31 = vmul.f32 %v2826_v48, %v2781_v54  ;;  %vm878_vm6 = vweird.f32 %v2781_v54  ;;  %v585_v12 = vmul.f32 0.003921569, %v553_v63  ;;  %vm890_vm9 = vmor %vm888_vm0, %vm889_vm3 }
 0x167   : > { %1143 = vst [vmem:[%s2411_s17 + $0x158] sm:$0xff] %v1079_v44  ;;  %v851_v11 = vsel %vm850_vm5, %v2773_v20, %v847_v5  ;;  %v913_v10 = vmul.f32 %v2832_v0, %v2784_v2  ;;  %vm918_vm7 = vweird.f32 %v2784_v2  ;;  %v2848_v26 = vadd.f32 1e-05, %v615_v59  ;;  %vm900_vm11 = vmor %vm898_vm2, %vm899_vm4  ;;  %v3379_v44 = vld [vmem:[#allocation54_spill] sm:$0xff]  ;;  %v1388_v5 = vld [vmem:[%s1606_s24 + $0x1a0] sm:$0xff] }
 0x168   : > { %v554_v4 = vsub.f32 %v456_v1, %v2755_v38  ;;  %v3369_v56 = vsub.f32 %v3367_v40, %v3368_v51  ;;  %v3371_v22 = vsub.f32 %v3370_v3, %v3368_v51  ;;  %v886_v20 = vsub.f32 1.5, %v885_v34  ;;  %v3384_v51 = vld [vmem:[#allocation44_spill] sm:$0xff] }
 0x169   : > { %v895_v23 = vmul.f32 0.5, %v894_v35  ;;  %v874_v37 = vmul.f32 %v2826_v48, %v873_v31  ;;  %vm879_vm8 = vweird.f32 %v2826_v48  ;;  %v914_v45 = vmul.f32 %v2832_v0, %v913_v10  ;;  %v1389_v35 = vld [vmem:[%s1606_s24 + $0x1a8] sm:$0xff] }
 0x16a   : > { %v1074_v58 = vmul.f32 %v3369_v56, %v851_v11  ;;  %v1075_v62 = vmul.f32 %v3371_v22, %v851_v11  ;;  %1376 = vrsqrt.f32 %v2848_v26  ;;  %v887_v38 = vmul.f32 %v2797_v46, %v886_v20  ;;  %vm880_vm12 = vmor %vm878_vm6, %vm879_vm8  ;;  %v3385_v56 = vld [vmem:[#allocation67_spill] sm:$0xff]  ;;  %v3387_v22 = vld [vmem:[#allocation45_spill] sm:$0xff] }
 0x16b   : > { %v896_v39 = vsub.f32 1.5, %v895_v23  ;;  %v2863_v36 = vadd.f32 1e-05, %v613_v57  ;;  %v617_v55 = vmax.f32 %v585_v12, 0.0  ;;  %v875_v61 = vmul.f32 0.5, %v874_v37  ;;  %v3383_v57 = vld [vmem:[#allocation49_spill] sm:$0xff] }
 0x16c   : > { %1138 = vst [vmem:[%s2411_s17 + $0x130] sm:$0xff] %v1074_v58  ;;  %v915_v17 = vmul.f32 0.5, %v914_v45  ;;  %v586_v13 = vmul.f32 0.003921569, %v554_v4  ;;  %v552_v63 = vsub.f32 %v450_v32, %v3372_v7  ;;  %v891_v60 = vsel %vm890_vm9, %v2797_v46, %v887_v38  ;;  %v459_v32 = vpop.xlane.xlu0 %458 }
 0x16d   : > { %1139 = vst [vmem:[%s2411_s17 + $0x138] sm:$0xff] %v1075_v62  ;;  %v897_v47 = vmul.f32 %v2802_v8, %v896_v39  ;;  %vm919_vm10 = vweird.f32 %v2832_v0  ;;  %1378 = vrsqrt.f32 %v2863_v36  ;;  %v3375_v43 = vsub.f32 %v3373_v29, %v3374_v28  ;;  %v1391_v29 = vld [vmem:[%s1606_s24 + $0x198] sm:$0xff] }
 0x16e   : > { %v3377_v6 = vsub.f32 %v3376_v27, %v3374_v28  ;;  %v876_v46 = vsub.f32 1.5, %v875_v61  ;;  %v916_v16 = vsub.f32 1.5, %v915_v17  ;;  %v2886_v50 = vadd.f32 1e-05, %v617_v55  ;;  %vm920_vm13 = vmor %vm918_vm7, %vm919_vm10 }
 0x16f   : > { %v1082_v42 = vmul.f32 %v3375_v43, %v891_v60  ;;  %v901_v41 = vsel %vm900_vm11, %v2802_v8, %v897_v47  ;;  %v618_v21 = vmax.f32 %v586_v13, 0.0  ;;  %v584_v9 = vmul.f32 0.003921569, %v552_v63  ;;  %v1390_v63 = vld [vmem:[%s1606_s24 + $0x190] sm:$0xff] }
 0x170   : > { %v1083_v33 = vmul.f32 %v3377_v6, %v891_v60  ;;  %v2888_v24 = vpop.eup %1376  ;;  %v3380_v49 = vsub.f32 %v3378_v14, %v3379_v44  ;;  %v3382_v53 = vsub.f32 %v3381_v30, %v3379_v44  ;;  %v877_v1 = vmul.f32 %v2826_v48, %v876_v46  ;;  %v3389_v60 = vld [vmem:[#allocation53_spill] sm:$0xff]  ;;  %v1392_v46 = vld [vmem:[%s1606_s24 + $0x1b0] sm:$0xff] }
 0x171   : > { %1146 = vst [vmem:[%s2411_s17 + $0x170] sm:$0xff] %v1082_v42  ;;  %v917_v8 = vmul.f32 %v2832_v0, %v916_v16  ;;  %v1024_v34 = vsub.f32 %v1388_v5, %v3383_v57  ;;  %v1025_v31 = vsub.f32 %v1389_v35, %v3383_v57  ;;  %v923_v12 = vmul.f32 %v2888_v24, %v2848_v26  ;;  %v1394_v35 = vld [vmem:[%s1606_s24 + $0x1d0] sm:$0xff] }
 0x172   : > { %v1084_v25 = vmul.f32 %v3380_v49, %v901_v41  ;;  %v1085_v59 = vmul.f32 %v3382_v53, %v901_v41  ;;  %1147 = vst [vmem:[%s2411_s17 + $0x178] sm:$0xff] %v1083_v33  ;;  %1380 = vrsqrt.f32 %v2886_v50  ;;  %v881_v54 = vsel %vm880_vm12, %v2826_v48, %v877_v1  ;;  %v1393_v41 = vld [vmem:[%s1606_s24 + $0x1b8] sm:$0xff] }
 0x173   : > { %v921_v11 = vsel %vm920_vm13, %v2832_v0, %v917_v8  ;;  %v2918_v10 = vadd.f32 1e-05, %v618_v21  ;;  %v616_v4 = vmax.f32 %v584_v9, 0.0  ;;  %v1379_v40 = vpop.eup %1378  ;;  %v523_v2 = vmul.f32 %v2740_v19, %v3344_v18 }
 0x174   : > { %1148 = vst [vmem:[%s2411_s17 + $0x180] sm:$0xff] %v1084_v25  ;;  %v3386_v58 = vsub.f32 %v3384_v51, %v3385_v56  ;;  %v3388_v48 = vsub.f32 %v3387_v22, %v3385_v56  ;;  %v1088_v0 = vmul.f32 %v1024_v34, %v921_v11  ;;  %v1089_v20 = vmul.f32 %v1025_v31, %v921_v11  ;;  %v3390_v31 = vld [vmem:[#allocation71_spill] sm:$0xff]  ;;  %v1397_v22 = vld [vmem:[%s1606_s24 + $0x1e8] sm:$0xff] }
 0x175   : > { %1149 = vst [vmem:[%s2411_s17 + $0x188] sm:$0xff] %v1085_v59  ;;  %v924_v23 = vmul.f32 %v2888_v24, %v923_v12  ;;  %v903_v37 = vmul.f32 %v1379_v40, %v2863_v36  ;;  %1382 = vrsqrt.f32 %v2918_v10  ;;  %v2933_v18 = vadd.f32 1e-05, %v616_v4 }
 0x176   : > { %v1080_v3 = vmul.f32 %v3386_v58, %v881_v54  ;;  %v1081_v62 = vmul.f32 %v3388_v48, %v881_v54  ;;  %v555_v45 = vsub.f32 %v459_v32, %v523_v2  ;;  %1152 = vst [vmem:[%s2411_s17 + $0x1a0] sm:$0xff] %v1088_v0  ;;  %vm929_vm14 = vweird.f32 %v2888_v24  ;;  %v1395_v54 = vld [vmem:[%s1606_s24 + $0x1d8] sm:$0xff]  ;;  %v1396_v32 = vld [vmem:[%s1606_s24 + $0x1e0] sm:$0xff] }
 0x177   : > { %v925_v38 = vmul.f32 0.5, %v924_v23  ;;  %v904_v39 = vmul.f32 %v1379_v40, %v903_v37  ;;  %1384 = vrsqrt.f32 %v2933_v18  ;;  %1153 = vst [vmem:[%s2411_s17 + $0x1a8] sm:$0xff] %v1089_v20  ;;  %v1022_v47 = vsub.f32 %v1390_v63, %v3389_v60 }
 0x178   : > { %1144 = vst [vmem:[%s2411_s17 + $0x160] sm:$0xff] %v1080_v3  ;;  %v1381_v55 = vpop.eup %1380  ;;  %v587_v61 = vmul.f32 0.003921569, %v555_v45  ;;  %v1023_v28 = vsub.f32 %v1391_v29, %v3389_v60  ;;  %vm928_vm15 = vweird.f32 %v2848_v26  ;;  %vm909_vm0 = vweird.f32 %v1379_v40 }
 0x179   : > { %1145 = vst [vmem:[%s2411_s17 + $0x168] sm:$0xff] %v1081_v62  ;;  %v926_v17 = vsub.f32 1.5, %v925_v38  ;;  %v905_v13 = vmul.f32 0.5, %v904_v39  ;;  %v943_v7 = vmul.f32 %v1381_v55, %v2886_v50  ;;  %v1026_v16 = vsub.f32 %v1392_v46, %v2371_v52  ;;  %vm930_vm1 = vmor %vm928_vm15, %vm929_vm14  ;;  %v3391_v38 = vld [vmem:[#allocation73_spill] sm:$0xff] }
 0x17a   : > { %v619_v43 = vmax.f32 %v587_v61, 0.0  ;;  %v1027_v21 = vsub.f32 %v1393_v41, %v2371_v52  ;;  %vm908_vm2 = vweird.f32 %v2863_v36  ;;  %vm949_vm4 = vweird.f32 %v1381_v55 }
 0x17b   : > { %v1383_v42 = vpop.eup %1382  ;;  %v927_v27 = vmul.f32 %v2888_v24, %v926_v17  ;;  %v906_v6 = vsub.f32 1.5, %v905_v13  ;;  %v944_v33 = vmul.f32 %v1381_v55, %v943_v7  ;;  %vm910_vm3 = vmor %vm908_vm2, %vm909_vm0  ;;  %vm948_vm5 = vweird.f32 %v2886_v50 }
 0x17c   : > { %v953_v9 = vmul.f32 %v1383_v42, %v2918_v10  ;;  %v2954_v26 = vadd.f32 1e-05, %v619_v43  ;;  %v1030_v12 = vsub.f32 %v1394_v35, %v3390_v31  ;;  %v1031_v11 = vsub.f32 %v1395_v54, %v3390_v31  ;;  %vm950_vm6 = vmor %vm948_vm5, %vm949_vm4 }
 0x17d   : > { %v931_v14 = vsel %vm930_vm1, %v2888_v24, %v927_v27  ;;  %v907_v44 = vmul.f32 %v1379_v40, %v906_v6  ;;  %v945_v49 = vmul.f32 0.5, %v944_v33  ;;  %v1385_v25 = vpop.eup %1384  ;;  %vm959_vm7 = vweird.f32 %v1383_v42 }
 0x17e   : > { %v1090_v30 = vmul.f32 %v1026_v16, %v931_v14  ;;  %v1091_v53 = vmul.f32 %v1027_v21, %v931_v14  ;;  %v954_v52 = vmul.f32 %v1383_v42, %v953_v9  ;;  %1386 = vrsqrt.f32 %v2954_v26 }
 0x17f   : > { %v911_v59 = vsel %vm910_vm3, %v1379_v40, %v907_v44  ;;  %v946_v1 = vsub.f32 1.5, %v945_v49  ;;  %v933_v24 = vmul.f32 %v1385_v25, %v2933_v18  ;;  %v1032_v40 = vsub.f32 %v1396_v32, %v2506_v15 }
 0x180   : > { %1154 = vst [vmem:[%s2411_s17 + $0x1b0] sm:$0xff] %v1090_v30  ;;  %v1086_v36 = vmul.f32 %v1022_v47, %v911_v59  ;;  %v1087_v8 = vmul.f32 %v1023_v28, %v911_v59  ;;  %v955_v5 = vmul.f32 0.5, %v954_v52  ;;  %vm958_vm8 = vweird.f32 %v2918_v10  ;;  %v1400_v47 = vld [vmem:[%s1606_s24 + $0x1f0] sm:$0xff]  ;;  %v1401_v28 = vld [vmem:[%s1606_s24 + $0x1f8] sm:$0xff] }
 0x181   : > { %1155 = vst [vmem:[%s2411_s17 + $0x1b8] sm:$0xff] %v1091_v53  ;;  %v947_v57 = vmul.f32 %v1381_v55, %v946_v1  ;;  %v934_v34 = vmul.f32 %v1385_v25, %v933_v24  ;;  %v1033_v48 = vsub.f32 %v1397_v22, %v2506_v15  ;;  %vm960_vm9 = vmor %vm958_vm8, %vm959_vm7  ;;  %vm939_vm10 = vweird.f32 %v1385_v25  ;;  %v1398_v15 = vld [vmem:[%s1606_s24 + $0x1c0] sm:$0xff] }
 0x182   : > { %1150 = vst [vmem:[%s2411_s17 + $0x190] sm:$0xff] %v1086_v36  ;;  %v956_v4 = vsub.f32 1.5, %v955_v5  ;;  %vm938_vm11 = vweird.f32 %v2933_v18  ;;  %v1028_v39 = vsub.f32 %v1398_v15, %v3391_v38  ;;  %vm968_vm14 = vweird.f32 %v2954_v26 }
 0x183   : > { %1151 = vst [vmem:[%s2411_s17 + $0x198] sm:$0xff] %v1087_v8  ;;  %v951_v2 = vsel %vm950_vm6, %v1381_v55, %v947_v57  ;;  %v935_v50 = vmul.f32 0.5, %v934_v34  ;;  %v1399_v55 = vld [vmem:[%s1606_s24 + $0x1c8] sm:$0xff]  ;;  %vm940_vm12 = vmor %vm938_vm11, %vm939_vm10  ;;  %v1034_v29 = vsub.f32 %v1400_v47, %v2740_v19  ;;  %v1035_v43 = vsub.f32 %v1401_v28, %v2740_v19 }
 0x184   : > { %v1387_v51 = vpop.eup %1386  ;;  %v1094_v56 = vmul.f32 %v1030_v12, %v951_v2  ;;  %v1095_v58 = vmul.f32 %v1031_v11, %v951_v2  ;;  %v957_v3 = vmul.f32 %v1383_v42, %v956_v4  ;;  %v1029_v61 = vsub.f32 %v1399_v55, %v3391_v38 }
 0x185   : > { %v936_v62 = vsub.f32 1.5, %v935_v50  ;;  %v963_v0 = vmul.f32 %v1387_v51, %v2954_v26  ;;  %vm969_vm13 = vweird.f32 %v1387_v51 }
 0x186   : > { %1158 = vst [vmem:[%s2411_s17 + $0x1d0] sm:$0xff] %v1094_v56  ;;  %v961_v20 = vsel %vm960_vm9, %v1383_v42, %v957_v3  ;;  %vm970_vm15 = vmor %vm968_vm14, %vm969_vm13 }
 0x187   : > { %1159 = vst [vmem:[%s2411_s17 + $0x1d8] sm:$0xff] %v1095_v58  ;;  %v1096_v23 = vmul.f32 %v1032_v40, %v961_v20  ;;  %v1097_v37 = vmul.f32 %v1033_v48, %v961_v20  ;;  %v937_v10 = vmul.f32 %v1385_v25, %v936_v62  ;;  %v964_v45 = vmul.f32 %v1387_v51, %v963_v0 }
 0x189   : > { %1160 = vst [vmem:[%s2411_s17 + $0x1e0] sm:$0xff] %v1096_v23  ;;  %v941_v18 = vsel %vm940_vm12, %v1385_v25, %v937_v10  ;;  %v965_v17 = vmul.f32 0.5, %v964_v45 }
 0x18a   : > { %1161 = vst [vmem:[%s2411_s17 + $0x1e8] sm:$0xff] %v1097_v37  ;;  %v1092_v13 = vmul.f32 %v1028_v39, %v941_v18  ;;  %v1093_v7 = vmul.f32 %v1029_v61, %v941_v18 }
 0x18b   : > { %v966_v63 = vsub.f32 1.5, %v965_v17 }
 0x18c   : > { %1156 = vst [vmem:[%s2411_s17 + $0x1c0] sm:$0xff] %v1092_v13 }
 0x18d   : > { %1157 = vst [vmem:[%s2411_s17 + $0x1c8] sm:$0xff] %v1093_v7  ;;  %v967_v60 = vmul.f32 %v1387_v51, %v966_v63 }
 0x18f   : > { %v971_v42 = vsel %vm970_vm15, %v1387_v51, %v967_v60 }
 0x190   : > { %v1098_v27 = vmul.f32 %v1034_v29, %v971_v42  ;;  %v1099_v6 = vmul.f32 %v1035_v43, %v971_v42 }
 0x192   : > { %1162 = vst [vmem:[%s2411_s17 + $0x1f0] sm:$0xff] %v1098_v27 }
 0x193   : > { %1163 = vst [vmem:[%s2411_s17 + $0x1f8] sm:$0xff] %v1099_v6 }
 0x194   : > { %1459 = shalt.err (!%p1456_p4)
}
 0x195   : > { %s1502_s16 = smov 256   ;;  %s1503_s20 = smov 16  }
 0x196   : > { %1276 = dma.vmem_to_hbm [thread:$0]  (%p1564_p11), %s1179_s28, 8192, %s1181_s29, %s1165_s30, %s1502_s16, %s1502_s16, %s1503_s20  }
 0x197 PF: > { %s1195_s21 = sand.u32 1, %s1486_s6   ;;  %p3392_p7 = scmp.ge.s32.totalorder %s1498_s9, 2 }
 0x198   : > { %s1196_s22 = scalar_lea.sflag [#allocation4], %s1195_s21 }
 0x199   : > { %p1283_p5 = pnand %p3392_p7, %p1568_p12 }
 0x19b   : > { %p1284_p8 = pneg %p1283_p5 }
 0x19d   : > { %1481 = dma.done.wait (%p1284_p8), %s1196_s22, 8192  }
 0x19e   : > { %1483 = vsyncadd (%p1284_p8), %s1196_s22, 4294959104  ;;  %p14_p10 = scmp.ge.s32.totalorder %s1539_s12, 4   ;;  %s3393_s6 = smov %s1490_s7 }
 0x19f   : > { %s3394_s7 = smov %s1494_s8  ;;  %s3395_s8 = smov %s1551_s15 }
 0x1a0   : > { %s3396_s9 = smov %s1539_s12  ;;  %16 = sbr.rel (!%p14_p10) target bundleno = 5 (0x5), region = 69 }
 0x1a5   :  { %1202 = vsyncpa [#allocation3], 1 }
 0x1a6   :  { %1204 = vsyncpa [#allocation3 + $0x1], 1 }
 0x1a7   :  { %1205 = vsyncpa [#allocation4], 1 }
 0x1a8   :  { %1207 = vsyncpa [#allocation4 + $0x1], 1 }

</bundles_post_ra>
